<compile_context>
chip_gen: v5e
topology: v5e:2x2
jax: 0.10.0
libtpu: 0.0.40
codegen_flags: <defaults>
</compile_context>

<pallas_src>
import math
from functools import partial

import jax
import jax.numpy as jnp
from jax.experimental import pallas as pl
from jax.experimental.pallas import tpu as pltpu


# ---------------------------------------------------------------------------
# Fused kernel: 14 GCN layers + residual averaging for ONE mesh per grid step.
# Everything (adj, all weights, all activations) is VMEM-resident; the layer
# loop is a static Python loop -> fully unrolled; all 28 matmuls hit the MXU
# with bf16 operands and f32 accumulation.
# ---------------------------------------------------------------------------
def _mdb_kernel(feat_ref, pool_ref, adj_ref, w_ref, b_ref,
                feats_ref, coords_ref, res_scratch,
                *, hidden, n_feat, n_pool):
    f32, bf16 = jnp.float32, jnp.bfloat16

    adj = adj_ref[0]            # (N, N) bf16 -- loaded once, reused by all layers
    feat = feat_ref[0]          # (N, n_feat) f32
    pool = pool_ref[0]          # (N, n_pool) f32

    def mm(a, b):               # bf16 MXU operands, f32 accumulate
        return jnp.dot(a.astype(bf16), b.astype(bf16),
                       preferred_element_type=f32)

    def gc(layer, x, fout, act):
        w = w_ref[layer][:hidden, :fout]          # static, sublane-aligned slice
        b = b_ref[layer][:, :fout]                # (1, fout) f32
        out = mm(adj, mm(x, w)) + b
        return jnp.maximum(out, 0.0) if act else out

    # ---- gc1: split-input matmul (no materialized concat) -------------------
    w0 = w_ref[0]
    support0 = (mm(feat, w0[:n_feat, :hidden])
                + mm(pool, w0[n_feat:n_feat + n_pool, :hidden]))
    x = jnp.maximum(mm(adj, support0) + b_ref[0][:, :hidden], 0.0)

    # ---- gc2 + residual full_features[:, :hidden] ----------------------------
    x = gc(1, x, hidden, True)
    if hidden <= n_feat:
        res0 = feat[:, :hidden]
    else:
        res_scratch[:, :n_feat] = feat
        res_scratch[:, n_feat:hidden] = pool[:, :hidden - n_feat]
        res0 = res_scratch[...]
    feats = (res0 + x) * 0.5

    for layer in range(2, 12, 2):       # gc3..gc12 : five residual pairs
        x = gc(layer, feats, hidden, True)
        x = gc(layer + 1, x, hidden, True)
        feats = (feats + x) * 0.5

    x = gc(12, feats, hidden, True)     # gc13 : single-layer residual
    feats = (feats + x) * 0.5

    # ---- gc15 at padded lane width (padding W/b columns are zero) ------------
    coords = gc(13, feats, coords_ref.shape[-1], False)

    feats_ref[0] = feats.astype(feats_ref.dtype)
    coords_ref[0] = coords.astype(coords_ref.dtype)


# ---------------------------------------------------------------------------
# Wrapper: one pallas_call over a "parallel" batch-of-meshes grid axis.
# ---------------------------------------------------------------------------
@partial(jax.jit, static_argnames=("hidden", "out_features"))
def mesh_deformation_block(features, pooled, adj, w_stack, b_stack,
                           *, hidden, out_features):
    B, N, n_feat = features.shape
    n_pool = pooled.shape[-1]
    n_in = n_feat + n_pool
    n_layers, fin_max, fout_max = w_stack.shape

    adj_bf = adj.astype(jnp.bfloat16)     # halves per-mesh adj DMA + VMEM
    w_bf = w_stack.astype(jnp.bfloat16)   # halves the resident weight slab

    kernel = partial(_mdb_kernel, hidden=hidden, n_feat=n_feat, n_pool=n_pool)

    flops = B * (2 * N * n_in * hidden + 2 * N * N * hidden
                 + 12 * (2 * N * hidden * hidden + 2 * N * N * hidden)
                 + 2 * N * hidden * out_features + 2 * N * N * out_features)
    bytes_accessed = (features.size * 4 + pooled.size * 4 + adj_bf.size * 2
                      + w_bf.size * 2 + b_stack.size * 4
                      + B * N * hidden * 4 + B * N * fout_max * 4)

    feats, coords_pad = pl.pallas_call(
        kernel,
        out_shape=(jax.ShapeDtypeStruct((B, N, hidden), jnp.float32),
                   jax.ShapeDtypeStruct((B, N, fout_max), jnp.float32)),
        grid_spec=pltpu.PrefetchScalarGridSpec(
            num_scalar_prefetch=0,
            grid=(B,),
            in_specs=[
                pl.BlockSpec((1, N, n_feat), lambda b: (b, 0, 0)),
                pl.BlockSpec((1, N, n_pool), lambda b: (b, 0, 0)),
                pl.BlockSpec((1, N, N), lambda b: (b, 0, 0)),
                # constant index_map -> weight/bias slabs DMA'd once, VMEM-resident
                pl.BlockSpec((n_layers, fin_max, fout_max), lambda b: (0, 0, 0)),
                pl.BlockSpec((n_layers, 1, fout_max), lambda b: (0, 0, 0)),
            ],
            out_specs=(
                pl.BlockSpec((1, N, hidden), lambda b: (b, 0, 0)),
                pl.BlockSpec((1, N, fout_max), lambda b: (b, 0, 0)),
            ),
            scratch_shapes=[pltpu.VMEM((N, hidden), jnp.float32)],
        ),
        compiler_params=pltpu.CompilerParams(
            dimension_semantics=("parallel",),
            vmem_limit_bytes=32 * 1024 * 1024),
        cost_estimate=pl.CostEstimate(flops=flops, transcendentals=0,
                                      bytes_accessed=bytes_accessed),
    )(features, pooled, adj_bf, w_bf, b_stack)

    return feats, coords_pad[..., :out_features]


# ---------------------------------------------------------------------------
# Deterministic parameter init (mirrors ZERON_GCN.reset_parameters), packed
# into zero-padded stacked slabs so the kernel takes two refs, not 28.
# ---------------------------------------------------------------------------
def init_mesh_deformation_params(key, input_features, hidden, output_features):
    fins = [input_features] + [hidden] * 13
    fouts = [hidden] * 13 + [output_features]
    fin_max, fout_max = max(fins), max(fouts)

    keys = jax.random.split(key, 14)
    w_stack = jnp.zeros((14, fin_max, fout_max), jnp.float32)
    b_stack = jnp.zeros((14, 1, fout_max), jnp.float32)
    for i in range(14):
        kw, kb = jax.random.split(keys[i])
        stdv = 0.3 * 6.0 / math.sqrt(fins[i] + fouts[i])
        w = jax.random.uniform(kw, (fins[i], fouts[i]), jnp.float32, -stdv, stdv)
        b = jax.random.uniform(kb, (1, fouts[i]), jnp.float32, -0.1, 0.1)
        w_stack = w_stack.at[i, :fins[i], :fouts[i]].set(w)
        b_stack = b_stack.at[i, :, :fouts[i]].set(b)
    return w_stack, b_stack


# ---------------------------------------------------------------------------
# Pure-JAX reference (single mesh).  mm_dtype=f32 gives the exact module
# semantics; mm_dtype=bf16 matches the kernel's bf16-operand / f32-accumulate
# numerics for a tighter check.
# ---------------------------------------------------------------------------
def _gcn_ref_single(features, pooled, adj, w_stack, b_stack,
                    hidden, out_features, mm_dtype):
    n_in = features.shape[1] + pooled.shape[1]
    fins = [n_in] + [hidden] * 13
    fouts = [hidden] * 13 + [out_features]

    def mm(a, b):
        return jnp.dot(a.astype(mm_dtype), b.astype(mm_dtype),
                       preferred_element_type=jnp.float32)

    def gc(i, x, act=True):
        w = w_stack[i, :fins[i], :fouts[i]]
        b = b_stack[i, :, :fouts[i]]
        out = mm(adj, mm(x, w)) + b
        return jnp.maximum(out, 0.0) if act else out

    full = jnp.concatenate([features, pooled], axis=1)
    x = gc(0, full)
    x = gc(1, x)
    feats = (full[:, :hidden] + x) * 0.5
    for i in range(2, 12, 2):
        x = gc(i, feats)
        x = gc(i + 1, x)
        feats = (feats + x) * 0.5
    x = gc(12, feats)
    feats = (feats + x) * 0.5
    coords = gc(13, feats, act=False)
    return feats, coords


if __name__ == "__main__":
    # Small, module-consistent shapes:
    #   B = 2 meshes, N = 64 vertices, per-vertex feats = 16, pooled image feats = 48
    #   -> input_features = 64, hidden = 32, output_features = 3
    B, N, FEAT, POOL = 2, 64, 16, 48
    HIDDEN, OUT = 32, 3
    INPUT_FEATURES = FEAT + POOL

    key = jax.random.PRNGKey(0)
    k_feat, k_pool, k_adj, k_params = jax.random.split(key, 4)

    features = jax.random.normal(k_feat, (B, N, FEAT), jnp.float32)
    pooled = jax.random.normal(k_pool, (B, N, POOL), jnp.float32)

    # Deterministic row-normalized dense adjacency (with self loops), per mesh.
    def make_adj(k):
        raw = (jax.random.uniform(k, (N, N)) > 0.8).astype(jnp.float32)
        raw = jnp.maximum(raw, raw.T) + jnp.eye(N, dtype=jnp.float32)
        return raw / jnp.sum(raw, axis=1, keepdims=True)

    adj = jnp.stack([make_adj(k) for k in jax.random.split(k_adj, B)])

    w_stack, b_stack = init_mesh_deformation_params(
        k_params, INPUT_FEATURES, HIDDEN, OUT)

    feats_out, coords_out = mesh_deformation_block(
        features, pooled, adj, w_stack, b_stack, hidden=HIDDEN, out_features=OUT)
    jax.block_until_ready((feats_out, coords_out))

    assert feats_out.shape == (B, N, HIDDEN) and coords_out.shape == (B, N, OUT)

    ref_f32 = jax.vmap(lambda f, p, a: _gcn_ref_single(
        f, p, a, w_stack, b_stack, HIDDEN, OUT, jnp.float32))
    feats_f32, coords_f32 = ref_f32(features, pooled, adj)

    ref_bf16 = jax.vmap(lambda f, p, a: _gcn_ref_single(
        f, p, a, w_stack, b_stack, HIDDEN, OUT, jnp.bfloat16))
    feats_bf, coords_bf = ref_bf16(features, pooled, adj)

    # Tight check vs a numerics-matched (bf16-operand, f32-accumulate) reference.
    assert jnp.allclose(feats_out, feats_bf, atol=1e-2, rtol=1e-2)
    assert jnp.allclose(coords_out, coords_bf, atol=1e-2, rtol=1e-2)
    # Looser check vs the exact-f32 module semantics (bf16 operand rounding over
    # 14 chained layers).
    assert jnp.allclose(feats_out, feats_f32, atol=5e-2, rtol=5e-2)
    assert jnp.allclose(coords_out, coords_f32, atol=5e-2, rtol=5e-2)

    print("KERNEL_OK")
</pallas_src>

<mosaic_0001>
module attributes {stable_mosaic.version = 11 : i64} {
  func.func @_mdb_kernel(%arg0: i32, %arg1: memref<1x64x16xf32, #tpu.memory_space<vmem>>, %arg2: memref<1x64x48xf32, #tpu.memory_space<vmem>>, %arg3: memref<1x64x64xbf16, #tpu.memory_space<vmem>>, %arg4: memref<14x64x32xbf16, #tpu.memory_space<vmem>>, %arg5: memref<14x1x32xf32, #tpu.memory_space<vmem>>, %arg6: memref<1x64x32xf32, #tpu.memory_space<vmem>>, %arg7: memref<1x64x32xf32, #tpu.memory_space<vmem>>, %arg8: memref<64x32xf32, #tpu.memory_space<vmem>>) attributes {dimension_semantics = [#tpu.dimension_semantics<parallel>], iteration_bounds = array<i64: 2>, scalar_prefetch = 0 : i64, scratch_operands = 1 : i64, tpu.core_type = #tpu.core_type<tc>, window_params = [{transform_indices = @transform_0, window_bounds = array<i64: 1, 64, 16>}, {transform_indices = @transform_1, window_bounds = array<i64: 1, 64, 48>}, {transform_indices = @transform_2, window_bounds = array<i64: 1, 64, 64>}, {pipeline_mode = #tpu.pipeline_mode<synchronous>, transform_indices = @transform_3, window_bounds = array<i64: 14, 64, 32>}, {pipeline_mode = #tpu.pipeline_mode<synchronous>, transform_indices = @transform_4, window_bounds = array<i64: 14, 1, 32>}, {transform_indices = @transform_5, window_bounds = array<i64: 1, 64, 32>}, {transform_indices = @transform_6, window_bounds = array<i64: 1, 64, 32>}]} {
    %c0 = arith.constant 0 : index
    %c0_0 = arith.constant 0 : index
    %c0_1 = arith.constant 0 : index
    %0 = vector.load %arg3[%c0, %c0_0, %c0_1] : memref<1x64x64xbf16, #tpu.memory_space<vmem>>, vector<1x64x64xbf16>
    %1 = vector.shape_cast %0 : vector<1x64x64xbf16> to vector<64x64xbf16>
    %c0_2 = arith.constant 0 : index
    %c0_3 = arith.constant 0 : index
    %c0_4 = arith.constant 0 : index
    %2 = vector.load %arg1[%c0_2, %c0_3, %c0_4] : memref<1x64x16xf32, #tpu.memory_space<vmem>>, vector<1x64x16xf32>
    %3 = vector.shape_cast %2 : vector<1x64x16xf32> to vector<64x16xf32>
    %c0_5 = arith.constant 0 : index
    %c0_6 = arith.constant 0 : index
    %c0_7 = arith.constant 0 : index
    %4 = vector.load %arg2[%c0_5, %c0_6, %c0_7] : memref<1x64x48xf32, #tpu.memory_space<vmem>>, vector<1x64x48xf32>
    %5 = vector.shape_cast %4 : vector<1x64x48xf32> to vector<64x48xf32>
    %c0_8 = arith.constant 0 : index
    %c0_9 = arith.constant 0 : index
    %c0_10 = arith.constant 0 : index
    %6 = vector.load %arg4[%c0_8, %c0_9, %c0_10] : memref<14x64x32xbf16, #tpu.memory_space<vmem>>, vector<1x64x32xbf16>
    %7 = vector.shape_cast %6 : vector<1x64x32xbf16> to vector<64x32xbf16>
    %8 = vector.extract_strided_slice %7 {offsets = [0, 0], sizes = [16, 32], strides = [1, 1]} : vector<64x32xbf16> to vector<16x32xbf16>
    %9 = arith.truncf %3 : vector<64x16xf32> to vector<64x16xbf16>
    %cst = arith.constant dense<0.000000e+00> : vector<64x32xf32>
    %10 = tpu.matmul %9, %8, %cst {dimension_numbers = #tpu.dot_dimension_numbers<[1], [0], [0], [1], [0, 0, 1, 1], [], []>} : vector<64x16xbf16>, vector<16x32xbf16>, vector<64x32xf32> -> vector<64x32xf32>
    %11 = vector.extract_strided_slice %7 {offsets = [16, 0], sizes = [48, 32], strides = [1, 1]} : vector<64x32xbf16> to vector<48x32xbf16>
    %12 = arith.truncf %5 : vector<64x48xf32> to vector<64x48xbf16>
    %cst_11 = arith.constant dense<0.000000e+00> : vector<64x32xf32>
    %13 = tpu.matmul %12, %11, %cst_11 {dimension_numbers = #tpu.dot_dimension_numbers<[1], [0], [0], [1], [0, 0, 1, 1], [], []>} : vector<64x48xbf16>, vector<48x32xbf16>, vector<64x32xf32> -> vector<64x32xf32>
    %14 = arith.addf %10, %13 : vector<64x32xf32>
    %15 = arith.truncf %14 : vector<64x32xf32> to vector<64x32xbf16>
    %cst_12 = arith.constant dense<0.000000e+00> : vector<64x32xf32>
    %16 = tpu.matmul %1, %15, %cst_12 {dimension_numbers = #tpu.dot_dimension_numbers<[1], [0], [0], [1], [0, 0, 1, 1], [], []>} : vector<64x64xbf16>, vector<64x32xbf16>, vector<64x32xf32> -> vector<64x32xf32>
    %c0_13 = arith.constant 0 : index
    %c0_14 = arith.constant 0 : index
    %c0_15 = arith.constant 0 : index
    %17 = vector.load %arg5[%c0_13, %c0_14, %c0_15] : memref<14x1x32xf32, #tpu.memory_space<vmem>>, vector<1x1x32xf32>
    %18 = vector.shape_cast %17 : vector<1x1x32xf32> to vector<1x32xf32>
    %19 = vector.broadcast %18 : vector<1x32xf32> to vector<64x32xf32>
    %20 = arith.addf %16, %19 : vector<64x32xf32>
    %cst_16 = arith.constant 0.000000e+00 : f32
    %21 = vector.broadcast %cst_16 : f32 to vector<64x32xf32>
    %22 = arith.maximumf %20, %21 : vector<64x32xf32>
    %c1 = arith.constant 1 : index
    %c0_17 = arith.constant 0 : index
    %c0_18 = arith.constant 0 : index
    %23 = vector.load %arg4[%c1, %c0_17, %c0_18] : memref<14x64x32xbf16, #tpu.memory_space<vmem>>, vector<1x64x32xbf16>
    %24 = vector.shape_cast %23 : vector<1x64x32xbf16> to vector<64x32xbf16>
    %25 = vector.extract_strided_slice %24 {offsets = [0, 0], sizes = [32, 32], strides = [1, 1]} : vector<64x32xbf16> to vector<32x32xbf16>
    %c1_19 = arith.constant 1 : index
    %c0_20 = arith.constant 0 : index
    %c0_21 = arith.constant 0 : index
    %26 = vector.load %arg5[%c1_19, %c0_20, %c0_21] : memref<14x1x32xf32, #tpu.memory_space<vmem>>, vector<1x1x32xf32>
    %27 = vector.shape_cast %26 : vector<1x1x32xf32> to vector<1x32xf32>
    %28 = arith.truncf %22 : vector<64x32xf32> to vector<64x32xbf16>
    %cst_22 = arith.constant dense<0.000000e+00> : vector<64x32xf32>
    %29 = tpu.matmul %28, %25, %cst_22 {dimension_numbers = #tpu.dot_dimension_numbers<[1], [0], [0], [1], [0, 0, 1, 1], [], []>} : vector<64x32xbf16>, vector<32x32xbf16>, vector<64x32xf32> -> vector<64x32xf32>
    %30 = arith.truncf %29 : vector<64x32xf32> to vector<64x32xbf16>
    %cst_23 = arith.constant dense<0.000000e+00> : vector<64x32xf32>
    %31 = tpu.matmul %1, %30, %cst_23 {dimension_numbers = #tpu.dot_dimension_numbers<[1], [0], [0], [1], [0, 0, 1, 1], [], []>} : vector<64x64xbf16>, vector<64x32xbf16>, vector<64x32xf32> -> vector<64x32xf32>
    %32 = vector.broadcast %27 : vector<1x32xf32> to vector<64x32xf32>
    %33 = arith.addf %31, %32 : vector<64x32xf32>
    %cst_24 = arith.constant 0.000000e+00 : f32
    %34 = vector.broadcast %cst_24 : f32 to vector<64x32xf32>
    %35 = arith.maximumf %33, %34 : vector<64x32xf32>
    %c0_25 = arith.constant 0 : index
    %c0_26 = arith.constant 0 : index
    %36 = vector.load %arg8[%c0_25, %c0_26] : memref<64x32xf32, #tpu.memory_space<vmem>>, vector<64x16xf32>
    tpu.vector_store %arg8[%c0_25, %c0_26], %3 {strides = array<i32>} : memref<64x32xf32, #tpu.memory_space<vmem>>, vector<64x16xf32>,
    %37 = vector.extract_strided_slice %5 {offsets = [0, 0], sizes = [64, 16], strides = [1, 1]} : vector<64x48xf32> to vector<64x16xf32>
    %c0_27 = arith.constant 0 : index
    %c16 = arith.constant 16 : index
    %38 = vector.load %arg8[%c0_27, %c16] : memref<64x32xf32, #tpu.memory_space<vmem>>, vector<64x16xf32>
    tpu.vector_store %arg8[%c0_27, %c16], %37 {strides = array<i32>} : memref<64x32xf32, #tpu.memory_space<vmem>>, vector<64x16xf32>,
    %c0_28 = arith.constant 0 : index
    %c0_29 = arith.constant 0 : index
    %39 = vector.load %arg8[%c0_28, %c0_29] : memref<64x32xf32, #tpu.memory_space<vmem>>, vector<64x32xf32>
    %40 = arith.addf %39, %35 : vector<64x32xf32>
    %cst_30 = arith.constant 5.000000e-01 : f32
    %41 = vector.broadcast %cst_30 : f32 to vector<64x32xf32>
    %42 = arith.mulf %40, %41 : vector<64x32xf32>
    %c2 = arith.constant 2 : index
    %c0_31 = arith.constant 0 : index
    %c0_32 = arith.constant 0 : index
    %43 = vector.load %arg4[%c2, %c0_31, %c0_32] : memref<14x64x32xbf16, #tpu.memory_space<vmem>>, vector<1x64x32xbf16>
    %44 = vector.shape_cast %43 : vector<1x64x32xbf16> to vector<64x32xbf16>
    %45 = vector.extract_strided_slice %44 {offsets = [0, 0], sizes = [32, 32], strides = [1, 1]} : vector<64x32xbf16> to vector<32x32xbf16>
    %c2_33 = arith.constant 2 : index
    %c0_34 = arith.constant 0 : index
    %c0_35 = arith.constant 0 : index
    %46 = vector.load %arg5[%c2_33, %c0_34, %c0_35] : memref<14x1x32xf32, #tpu.memory_space<vmem>>, vector<1x1x32xf32>
    %47 = vector.shape_cast %46 : vector<1x1x32xf32> to vector<1x32xf32>
    %48 = arith.truncf %42 : vector<64x32xf32> to vector<64x32xbf16>
    %cst_36 = arith.constant dense<0.000000e+00> : vector<64x32xf32>
    %49 = tpu.matmul %48, %45, %cst_36 {dimension_numbers = #tpu.dot_dimension_numbers<[1], [0], [0], [1], [0, 0, 1, 1], [], []>} : vector<64x32xbf16>, vector<32x32xbf16>, vector<64x32xf32> -> vector<64x32xf32>
    %50 = arith.truncf %49 : vector<64x32xf32> to vector<64x32xbf16>
    %cst_37 = arith.constant dense<0.000000e+00> : vector<64x32xf32>
    %51 = tpu.matmul %1, %50, %cst_37 {dimension_numbers = #tpu.dot_dimension_numbers<[1], [0], [0], [1], [0, 0, 1, 1], [], []>} : vector<64x64xbf16>, vector<64x32xbf16>, vector<64x32xf32> -> vector<64x32xf32>
    %52 = vector.broadcast %47 : vector<1x32xf32> to vector<64x32xf32>
    %53 = arith.addf %51, %52 : vector<64x32xf32>
    %cst_38 = arith.constant 0.000000e+00 : f32
    %54 = vector.broadcast %cst_38 : f32 to vector<64x32xf32>
    %55 = arith.maximumf %53, %54 : vector<64x32xf32>
    %c3 = arith.constant 3 : index
    %c0_39 = arith.constant 0 : index
    %c0_40 = arith.constant 0 : index
    %56 = vector.load %arg4[%c3, %c0_39, %c0_40] : memref<14x64x32xbf16, #tpu.memory_space<vmem>>, vector<1x64x32xbf16>
    %57 = vector.shape_cast %56 : vector<1x64x32xbf16> to vector<64x32xbf16>
    %58 = vector.extract_strided_slice %57 {offsets = [0, 0], sizes = [32, 32], strides = [1, 1]} : vector<64x32xbf16> to vector<32x32xbf16>
    %c3_41 = arith.constant 3 : index
    %c0_42 = arith.constant 0 : index
    %c0_43 = arith.constant 0 : index
    %59 = vector.load %arg5[%c3_41, %c0_42, %c0_43] : memref<14x1x32xf32, #tpu.memory_space<vmem>>, vector<1x1x32xf32>
    %60 = vector.shape_cast %59 : vector<1x1x32xf32> to vector<1x32xf32>
    %61 = arith.truncf %55 : vector<64x32xf32> to vector<64x32xbf16>
    %cst_44 = arith.constant dense<0.000000e+00> : vector<64x32xf32>
    %62 = tpu.matmul %61, %58, %cst_44 {dimension_numbers = #tpu.dot_dimension_numbers<[1], [0], [0], [1], [0, 0, 1, 1], [], []>} : vector<64x32xbf16>, vector<32x32xbf16>, vector<64x32xf32> -> vector<64x32xf32>
    %63 = arith.truncf %62 : vector<64x32xf32> to vector<64x32xbf16>
    %cst_45 = arith.constant dense<0.000000e+00> : vector<64x32xf32>
    %64 = tpu.matmul %1, %63, %cst_45 {dimension_numbers = #tpu.dot_dimension_numbers<[1], [0], [0], [1], [0, 0, 1, 1], [], []>} : vector<64x64xbf16>, vector<64x32xbf16>, vector<64x32xf32> -> vector<64x32xf32>
    %65 = vector.broadcast %60 : vector<1x32xf32> to vector<64x32xf32>
    %66 = arith.addf %64, %65 : vector<64x32xf32>
    %cst_46 = arith.constant 0.000000e+00 : f32
    %67 = vector.broadcast %cst_46 : f32 to vector<64x32xf32>
    %68 = arith.maximumf %66, %67 : vector<64x32xf32>
    %69 = arith.addf %42, %68 : vector<64x32xf32>
    %cst_47 = arith.constant 5.000000e-01 : f32
    %70 = vector.broadcast %cst_47 : f32 to vector<64x32xf32>
    %71 = arith.mulf %69, %70 : vector<64x32xf32>
    %c4 = arith.constant 4 : index
    %c0_48 = arith.constant 0 : index
    %c0_49 = arith.constant 0 : index
    %72 = vector.load %arg4[%c4, %c0_48, %c0_49] : memref<14x64x32xbf16, #tpu.memory_space<vmem>>, vector<1x64x32xbf16>
    %73 = vector.shape_cast %72 : vector<1x64x32xbf16> to vector<64x32xbf16>
    %74 = vector.extract_strided_slice %73 {offsets = [0, 0], sizes = [32, 32], strides = [1, 1]} : vector<64x32xbf16> to vector<32x32xbf16>
    %c4_50 = arith.constant 4 : index
    %c0_51 = arith.constant 0 : index
    %c0_52 = arith.constant 0 : index
    %75 = vector.load %arg5[%c4_50, %c0_51, %c0_52] : memref<14x1x32xf32, #tpu.memory_space<vmem>>, vector<1x1x32xf32>
    %76 = vector.shape_cast %75 : vector<1x1x32xf32> to vector<1x32xf32>
    %77 = arith.truncf %71 : vector<64x32xf32> to vector<64x32xbf16>
    %cst_53 = arith.constant dense<0.000000e+00> : vector<64x32xf32>
    %78 = tpu.matmul %77, %74, %cst_53 {dimension_numbers = #tpu.dot_dimension_numbers<[1], [0], [0], [1], [0, 0, 1, 1], [], []>} : vector<64x32xbf16>, vector<32x32xbf16>, vector<64x32xf32> -> vector<64x32xf32>
    %79 = arith.truncf %78 : vector<64x32xf32> to vector<64x32xbf16>
    %cst_54 = arith.constant dense<0.000000e+00> : vector<64x32xf32>
    %80 = tpu.matmul %1, %79, %cst_54 {dimension_numbers = #tpu.dot_dimension_numbers<[1], [0], [0], [1], [0, 0, 1, 1], [], []>} : vector<64x64xbf16>, vector<64x32xbf16>, vector<64x32xf32> -> vector<64x32xf32>
    %81 = vector.broadcast %76 : vector<1x32xf32> to vector<64x32xf32>
    %82 = arith.addf %80, %81 : vector<64x32xf32>
    %cst_55 = arith.constant 0.000000e+00 : f32
    %83 = vector.broadcast %cst_55 : f32 to vector<64x32xf32>
    %84 = arith.maximumf %82, %83 : vector<64x32xf32>
    %c5 = arith.constant 5 : index
    %c0_56 = arith.constant 0 : index
    %c0_57 = arith.constant 0 : index
    %85 = vector.load %arg4[%c5, %c0_56, %c0_57] : memref<14x64x32xbf16, #tpu.memory_space<vmem>>, vector<1x64x32xbf16>
    %86 = vector.shape_cast %85 : vector<1x64x32xbf16> to vector<64x32xbf16>
    %87 = vector.extract_strided_slice %86 {offsets = [0, 0], sizes = [32, 32], strides = [1, 1]} : vector<64x32xbf16> to vector<32x32xbf16>
    %c5_58 = arith.constant 5 : index
    %c0_59 = arith.constant 0 : index
    %c0_60 = arith.constant 0 : index
    %88 = vector.load %arg5[%c5_58, %c0_59, %c0_60] : memref<14x1x32xf32, #tpu.memory_space<vmem>>, vector<1x1x32xf32>
    %89 = vector.shape_cast %88 : vector<1x1x32xf32> to vector<1x32xf32>
    %90 = arith.truncf %84 : vector<64x32xf32> to vector<64x32xbf16>
    %cst_61 = arith.constant dense<0.000000e+00> : vector<64x32xf32>
    %91 = tpu.matmul %90, %87, %cst_61 {dimension_numbers = #tpu.dot_dimension_numbers<[1], [0], [0], [1], [0, 0, 1, 1], [], []>} : vector<64x32xbf16>, vector<32x32xbf16>, vector<64x32xf32> -> vector<64x32xf32>
    %92 = arith.truncf %91 : vector<64x32xf32> to vector<64x32xbf16>
    %cst_62 = arith.constant dense<0.000000e+00> : vector<64x32xf32>
    %93 = tpu.matmul %1, %92, %cst_62 {dimension_numbers = #tpu.dot_dimension_numbers<[1], [0], [0], [1], [0, 0, 1, 1], [], []>} : vector<64x64xbf16>, vector<64x32xbf16>, vector<64x32xf32> -> vector<64x32xf32>
    %94 = vector.broadcast %89 : vector<1x32xf32> to vector<64x32xf32>
    %95 = arith.addf %93, %94 : vector<64x32xf32>
    %cst_63 = arith.constant 0.000000e+00 : f32
    %96 = vector.broadcast %cst_63 : f32 to vector<64x32xf32>
    %97 = arith.maximumf %95, %96 : vector<64x32xf32>
    %98 = arith.addf %71, %97 : vector<64x32xf32>
    %cst_64 = arith.constant 5.000000e-01 : f32
    %99 = vector.broadcast %cst_64 : f32 to vector<64x32xf32>
    %100 = arith.mulf %98, %99 : vector<64x32xf32>
    %c6 = arith.constant 6 : index
    %c0_65 = arith.constant 0 : index
    %c0_66 = arith.constant 0 : index
    %101 = vector.load %arg4[%c6, %c0_65, %c0_66] : memref<14x64x32xbf16, #tpu.memory_space<vmem>>, vector<1x64x32xbf16>
    %102 = vector.shape_cast %101 : vector<1x64x32xbf16> to vector<64x32xbf16>
    %103 = vector.extract_strided_slice %102 {offsets = [0, 0], sizes = [32, 32], strides = [1, 1]} : vector<64x32xbf16> to vector<32x32xbf16>
    %c6_67 = arith.constant 6 : index
    %c0_68 = arith.constant 0 : index
    %c0_69 = arith.constant 0 : index
    %104 = vector.load %arg5[%c6_67, %c0_68, %c0_69] : memref<14x1x32xf32, #tpu.memory_space<vmem>>, vector<1x1x32xf32>
    %105 = vector.shape_cast %104 : vector<1x1x32xf32> to vector<1x32xf32>
    %106 = arith.truncf %100 : vector<64x32xf32> to vector<64x32xbf16>
    %cst_70 = arith.constant dense<0.000000e+00> : vector<64x32xf32>
    %107 = tpu.matmul %106, %103, %cst_70 {dimension_numbers = #tpu.dot_dimension_numbers<[1], [0], [0], [1], [0, 0, 1, 1], [], []>} : vector<64x32xbf16>, vector<32x32xbf16>, vector<64x32xf32> -> vector<64x32xf32>
    %108 = arith.truncf %107 : vector<64x32xf32> to vector<64x32xbf16>
    %cst_71 = arith.constant dense<0.000000e+00> : vector<64x32xf32>
    %109 = tpu.matmul %1, %108, %cst_71 {dimension_numbers = #tpu.dot_dimension_numbers<[1], [0], [0], [1], [0, 0, 1, 1], [], []>} : vector<64x64xbf16>, vector<64x32xbf16>, vector<64x32xf32> -> vector<64x32xf32>
    %110 = vector.broadcast %105 : vector<1x32xf32> to vector<64x32xf32>
    %111 = arith.addf %109, %110 : vector<64x32xf32>
    %cst_72 = arith.constant 0.000000e+00 : f32
    %112 = vector.broadcast %cst_72 : f32 to vector<64x32xf32>
    %113 = arith.maximumf %111, %112 : vector<64x32xf32>
    %c7 = arith.constant 7 : index
    %c0_73 = arith.constant 0 : index
    %c0_74 = arith.constant 0 : index
    %114 = vector.load %arg4[%c7, %c0_73, %c0_74] : memref<14x64x32xbf16, #tpu.memory_space<vmem>>, vector<1x64x32xbf16>
    %115 = vector.shape_cast %114 : vector<1x64x32xbf16> to vector<64x32xbf16>
    %116 = vector.extract_strided_slice %115 {offsets = [0, 0], sizes = [32, 32], strides = [1, 1]} : vector<64x32xbf16> to vector<32x32xbf16>
    %c7_75 = arith.constant 7 : index
    %c0_76 = arith.constant 0 : index
    %c0_77 = arith.constant 0 : index
    %117 = vector.load %arg5[%c7_75, %c0_76, %c0_77] : memref<14x1x32xf32, #tpu.memory_space<vmem>>, vector<1x1x32xf32>
    %118 = vector.shape_cast %117 : vector<1x1x32xf32> to vector<1x32xf32>
    %119 = arith.truncf %113 : vector<64x32xf32> to vector<64x32xbf16>
    %cst_78 = arith.constant dense<0.000000e+00> : vector<64x32xf32>
    %120 = tpu.matmul %119, %116, %cst_78 {dimension_numbers = #tpu.dot_dimension_numbers<[1], [0], [0], [1], [0, 0, 1, 1], [], []>} : vector<64x32xbf16>, vector<32x32xbf16>, vector<64x32xf32> -> vector<64x32xf32>
    %121 = arith.truncf %120 : vector<64x32xf32> to vector<64x32xbf16>
    %cst_79 = arith.constant dense<0.000000e+00> : vector<64x32xf32>
    %122 = tpu.matmul %1, %121, %cst_79 {dimension_numbers = #tpu.dot_dimension_numbers<[1], [0], [0], [1], [0, 0, 1, 1], [], []>} : vector<64x64xbf16>, vector<64x32xbf16>, vector<64x32xf32> -> vector<64x32xf32>
    %123 = vector.broadcast %118 : vector<1x32xf32> to vector<64x32xf32>
    %124 = arith.addf %122, %123 : vector<64x32xf32>
    %cst_80 = arith.constant 0.000000e+00 : f32
    %125 = vector.broadcast %cst_80 : f32 to vector<64x32xf32>
    %126 = arith.maximumf %124, %125 : vector<64x32xf32>
    %127 = arith.addf %100, %126 : vector<64x32xf32>
    %cst_81 = arith.constant 5.000000e-01 : f32
    %128 = vector.broadcast %cst_81 : f32 to vector<64x32xf32>
    %129 = arith.mulf %127, %128 : vector<64x32xf32>
    %c8 = arith.constant 8 : index
    %c0_82 = arith.constant 0 : index
    %c0_83 = arith.constant 0 : index
    %130 = vector.load %arg4[%c8, %c0_82, %c0_83] : memref<14x64x32xbf16, #tpu.memory_space<vmem>>, vector<1x64x32xbf16>
    %131 = vector.shape_cast %130 : vector<1x64x32xbf16> to vector<64x32xbf16>
    %132 = vector.extract_strided_slice %131 {offsets = [0, 0], sizes = [32, 32], strides = [1, 1]} : vector<64x32xbf16> to vector<32x32xbf16>
    %c8_84 = arith.constant 8 : index
    %c0_85 = arith.constant 0 : index
    %c0_86 = arith.constant 0 : index
    %133 = vector.load %arg5[%c8_84, %c0_85, %c0_86] : memref<14x1x32xf32, #tpu.memory_space<vmem>>, vector<1x1x32xf32>
    %134 = vector.shape_cast %133 : vector<1x1x32xf32> to vector<1x32xf32>
    %135 = arith.truncf %129 : vector<64x32xf32> to vector<64x32xbf16>
    %cst_87 = arith.constant dense<0.000000e+00> : vector<64x32xf32>
    %136 = tpu.matmul %135, %132, %cst_87 {dimension_numbers = #tpu.dot_dimension_numbers<[1], [0], [0], [1], [0, 0, 1, 1], [], []>} : vector<64x32xbf16>, vector<32x32xbf16>, vector<64x32xf32> -> vector<64x32xf32>
    %137 = arith.truncf %136 : vector<64x32xf32> to vector<64x32xbf16>
    %cst_88 = arith.constant dense<0.000000e+00> : vector<64x32xf32>
    %138 = tpu.matmul %1, %137, %cst_88 {dimension_numbers = #tpu.dot_dimension_numbers<[1], [0], [0], [1], [0, 0, 1, 1], [], []>} : vector<64x64xbf16>, vector<64x32xbf16>, vector<64x32xf32> -> vector<64x32xf32>
    %139 = vector.broadcast %134 : vector<1x32xf32> to vector<64x32xf32>
    %140 = arith.addf %138, %139 : vector<64x32xf32>
    %cst_89 = arith.constant 0.000000e+00 : f32
    %141 = vector.broadcast %cst_89 : f32 to vector<64x32xf32>
    %142 = arith.maximumf %140, %141 : vector<64x32xf32>
    %c9 = arith.constant 9 : index
    %c0_90 = arith.constant 0 : index
    %c0_91 = arith.constant 0 : index
    %143 = vector.load %arg4[%c9, %c0_90, %c0_91] : memref<14x64x32xbf16, #tpu.memory_space<vmem>>, vector<1x64x32xbf16>
    %144 = vector.shape_cast %143 : vector<1x64x32xbf16> to vector<64x32xbf16>
    %145 = vector.extract_strided_slice %144 {offsets = [0, 0], sizes = [32, 32], strides = [1, 1]} : vector<64x32xbf16> to vector<32x32xbf16>
    %c9_92 = arith.constant 9 : index
    %c0_93 = arith.constant 0 : index
    %c0_94 = arith.constant 0 : index
    %146 = vector.load %arg5[%c9_92, %c0_93, %c0_94] : memref<14x1x32xf32, #tpu.memory_space<vmem>>, vector<1x1x32xf32>
    %147 = vector.shape_cast %146 : vector<1x1x32xf32> to vector<1x32xf32>
    %148 = arith.truncf %142 : vector<64x32xf32> to vector<64x32xbf16>
    %cst_95 = arith.constant dense<0.000000e+00> : vector<64x32xf32>
    %149 = tpu.matmul %148, %145, %cst_95 {dimension_numbers = #tpu.dot_dimension_numbers<[1], [0], [0], [1], [0, 0, 1, 1], [], []>} : vector<64x32xbf16>, vector<32x32xbf16>, vector<64x32xf32> -> vector<64x32xf32>
    %150 = arith.truncf %149 : vector<64x32xf32> to vector<64x32xbf16>
    %cst_96 = arith.constant dense<0.000000e+00> : vector<64x32xf32>
    %151 = tpu.matmul %1, %150, %cst_96 {dimension_numbers = #tpu.dot_dimension_numbers<[1], [0], [0], [1], [0, 0, 1, 1], [], []>} : vector<64x64xbf16>, vector<64x32xbf16>, vector<64x32xf32> -> vector<64x32xf32>
    %152 = vector.broadcast %147 : vector<1x32xf32> to vector<64x32xf32>
    %153 = arith.addf %151, %152 : vector<64x32xf32>
    %cst_97 = arith.constant 0.000000e+00 : f32
    %154 = vector.broadcast %cst_97 : f32 to vector<64x32xf32>
    %155 = arith.maximumf %153, %154 : vector<64x32xf32>
    %156 = arith.addf %129, %155 : vector<64x32xf32>
    %cst_98 = arith.constant 5.000000e-01 : f32
    %157 = vector.broadcast %cst_98 : f32 to vector<64x32xf32>
    %158 = arith.mulf %156, %157 : vector<64x32xf32>
    %c10 = arith.constant 10 : index
    %c0_99 = arith.constant 0 : index
    %c0_100 = arith.constant 0 : index
    %159 = vector.load %arg4[%c10, %c0_99, %c0_100] : memref<14x64x32xbf16, #tpu.memory_space<vmem>>, vector<1x64x32xbf16>
    %160 = vector.shape_cast %159 : vector<1x64x32xbf16> to vector<64x32xbf16>
    %161 = vector.extract_strided_slice %160 {offsets = [0, 0], sizes = [32, 32], strides = [1, 1]} : vector<64x32xbf16> to vector<32x32xbf16>
    %c10_101 = arith.constant 10 : index
    %c0_102 = arith.constant 0 : index
    %c0_103 = arith.constant 0 : index
    %162 = vector.load %arg5[%c10_101, %c0_102, %c0_103] : memref<14x1x32xf32, #tpu.memory_space<vmem>>, vector<1x1x32xf32>
    %163 = vector.shape_cast %162 : vector<1x1x32xf32> to vector<1x32xf32>
    %164 = arith.truncf %158 : vector<64x32xf32> to vector<64x32xbf16>
    %cst_104 = arith.constant dense<0.000000e+00> : vector<64x32xf32>
    %165 = tpu.matmul %164, %161, %cst_104 {dimension_numbers = #tpu.dot_dimension_numbers<[1], [0], [0], [1], [0, 0, 1, 1], [], []>} : vector<64x32xbf16>, vector<32x32xbf16>, vector<64x32xf32> -> vector<64x32xf32>
    %166 = arith.truncf %165 : vector<64x32xf32> to vector<64x32xbf16>
    %cst_105 = arith.constant dense<0.000000e+00> : vector<64x32xf32>
    %167 = tpu.matmul %1, %166, %cst_105 {dimension_numbers = #tpu.dot_dimension_numbers<[1], [0], [0], [1], [0, 0, 1, 1], [], []>} : vector<64x64xbf16>, vector<64x32xbf16>, vector<64x32xf32> -> vector<64x32xf32>
    %168 = vector.broadcast %163 : vector<1x32xf32> to vector<64x32xf32>
    %169 = arith.addf %167, %168 : vector<64x32xf32>
    %cst_106 = arith.constant 0.000000e+00 : f32
    %170 = vector.broadcast %cst_106 : f32 to vector<64x32xf32>
    %171 = arith.maximumf %169, %170 : vector<64x32xf32>
    %c11 = arith.constant 11 : index
    %c0_107 = arith.constant 0 : index
    %c0_108 = arith.constant 0 : index
    %172 = vector.load %arg4[%c11, %c0_107, %c0_108] : memref<14x64x32xbf16, #tpu.memory_space<vmem>>, vector<1x64x32xbf16>
    %173 = vector.shape_cast %172 : vector<1x64x32xbf16> to vector<64x32xbf16>
    %174 = vector.extract_strided_slice %173 {offsets = [0, 0], sizes = [32, 32], strides = [1, 1]} : vector<64x32xbf16> to vector<32x32xbf16>
    %c11_109 = arith.constant 11 : index
    %c0_110 = arith.constant 0 : index
    %c0_111 = arith.constant 0 : index
    %175 = vector.load %arg5[%c11_109, %c0_110, %c0_111] : memref<14x1x32xf32, #tpu.memory_space<vmem>>, vector<1x1x32xf32>
    %176 = vector.shape_cast %175 : vector<1x1x32xf32> to vector<1x32xf32>
    %177 = arith.truncf %171 : vector<64x32xf32> to vector<64x32xbf16>
    %cst_112 = arith.constant dense<0.000000e+00> : vector<64x32xf32>
    %178 = tpu.matmul %177, %174, %cst_112 {dimension_numbers = #tpu.dot_dimension_numbers<[1], [0], [0], [1], [0, 0, 1, 1], [], []>} : vector<64x32xbf16>, vector<32x32xbf16>, vector<64x32xf32> -> vector<64x32xf32>
    %179 = arith.truncf %178 : vector<64x32xf32> to vector<64x32xbf16>
    %cst_113 = arith.constant dense<0.000000e+00> : vector<64x32xf32>
    %180 = tpu.matmul %1, %179, %cst_113 {dimension_numbers = #tpu.dot_dimension_numbers<[1], [0], [0], [1], [0, 0, 1, 1], [], []>} : vector<64x64xbf16>, vector<64x32xbf16>, vector<64x32xf32> -> vector<64x32xf32>
    %181 = vector.broadcast %176 : vector<1x32xf32> to vector<64x32xf32>
    %182 = arith.addf %180, %181 : vector<64x32xf32>
    %cst_114 = arith.constant 0.000000e+00 : f32
    %183 = vector.broadcast %cst_114 : f32 to vector<64x32xf32>
    %184 = arith.maximumf %182, %183 : vector<64x32xf32>
    %185 = arith.addf %158, %184 : vector<64x32xf32>
    %cst_115 = arith.constant 5.000000e-01 : f32
    %186 = vector.broadcast %cst_115 : f32 to vector<64x32xf32>
    %187 = arith.mulf %185, %186 : vector<64x32xf32>
    %c12 = arith.constant 12 : index
    %c0_116 = arith.constant 0 : index
    %c0_117 = arith.constant 0 : index
    %188 = vector.load %arg4[%c12, %c0_116, %c0_117] : memref<14x64x32xbf16, #tpu.memory_space<vmem>>, vector<1x64x32xbf16>
    %189 = vector.shape_cast %188 : vector<1x64x32xbf16> to vector<64x32xbf16>
    %190 = vector.extract_strided_slice %189 {offsets = [0, 0], sizes = [32, 32], strides = [1, 1]} : vector<64x32xbf16> to vector<32x32xbf16>
    %c12_118 = arith.constant 12 : index
    %c0_119 = arith.constant 0 : index
    %c0_120 = arith.constant 0 : index
    %191 = vector.load %arg5[%c12_118, %c0_119, %c0_120] : memref<14x1x32xf32, #tpu.memory_space<vmem>>, vector<1x1x32xf32>
    %192 = vector.shape_cast %191 : vector<1x1x32xf32> to vector<1x32xf32>
    %193 = arith.truncf %187 : vector<64x32xf32> to vector<64x32xbf16>
    %cst_121 = arith.constant dense<0.000000e+00> : vector<64x32xf32>
    %194 = tpu.matmul %193, %190, %cst_121 {dimension_numbers = #tpu.dot_dimension_numbers<[1], [0], [0], [1], [0, 0, 1, 1], [], []>} : vector<64x32xbf16>, vector<32x32xbf16>, vector<64x32xf32> -> vector<64x32xf32>
    %195 = arith.truncf %194 : vector<64x32xf32> to vector<64x32xbf16>
    %cst_122 = arith.constant dense<0.000000e+00> : vector<64x32xf32>
    %196 = tpu.matmul %1, %195, %cst_122 {dimension_numbers = #tpu.dot_dimension_numbers<[1], [0], [0], [1], [0, 0, 1, 1], [], []>} : vector<64x64xbf16>, vector<64x32xbf16>, vector<64x32xf32> -> vector<64x32xf32>
    %197 = vector.broadcast %192 : vector<1x32xf32> to vector<64x32xf32>
    %198 = arith.addf %196, %197 : vector<64x32xf32>
    %cst_123 = arith.constant 0.000000e+00 : f32
    %199 = vector.broadcast %cst_123 : f32 to vector<64x32xf32>
    %200 = arith.maximumf %198, %199 : vector<64x32xf32>
    %201 = arith.addf %187, %200 : vector<64x32xf32>
    %cst_124 = arith.constant 5.000000e-01 : f32
    %202 = vector.broadcast %cst_124 : f32 to vector<64x32xf32>
    %203 = arith.mulf %201, %202 : vector<64x32xf32>
    %c13 = arith.constant 13 : index
    %c0_125 = arith.constant 0 : index
    %c0_126 = arith.constant 0 : index
    %204 = vector.load %arg4[%c13, %c0_125, %c0_126] : memref<14x64x32xbf16, #tpu.memory_space<vmem>>, vector<1x64x32xbf16>
    %205 = vector.shape_cast %204 : vector<1x64x32xbf16> to vector<64x32xbf16>
    %206 = vector.extract_strided_slice %205 {offsets = [0, 0], sizes = [32, 32], strides = [1, 1]} : vector<64x32xbf16> to vector<32x32xbf16>
    %c13_127 = arith.constant 13 : index
    %c0_128 = arith.constant 0 : index
    %c0_129 = arith.constant 0 : index
    %207 = vector.load %arg5[%c13_127, %c0_128, %c0_129] : memref<14x1x32xf32, #tpu.memory_space<vmem>>, vector<1x1x32xf32>
    %208 = vector.shape_cast %207 : vector<1x1x32xf32> to vector<1x32xf32>
    %209 = arith.truncf %203 : vector<64x32xf32> to vector<64x32xbf16>
    %cst_130 = arith.constant dense<0.000000e+00> : vector<64x32xf32>
    %210 = tpu.matmul %209, %206, %cst_130 {dimension_numbers = #tpu.dot_dimension_numbers<[1], [0], [0], [1], [0, 0, 1, 1], [], []>} : vector<64x32xbf16>, vector<32x32xbf16>, vector<64x32xf32> -> vector<64x32xf32>
    %211 = arith.truncf %210 : vector<64x32xf32> to vector<64x32xbf16>
    %cst_131 = arith.constant dense<0.000000e+00> : vector<64x32xf32>
    %212 = tpu.matmul %1, %211, %cst_131 {dimension_numbers = #tpu.dot_dimension_numbers<[1], [0], [0], [1], [0, 0, 1, 1], [], []>} : vector<64x64xbf16>, vector<64x32xbf16>, vector<64x32xf32> -> vector<64x32xf32>
    %213 = vector.broadcast %208 : vector<1x32xf32> to vector<64x32xf32>
    %214 = arith.addf %212, %213 : vector<64x32xf32>
    %c0_132 = arith.constant 0 : index
    %c0_133 = arith.constant 0 : index
    %c0_134 = arith.constant 0 : index
    %215 = vector.load %arg6[%c0_132, %c0_133, %c0_134] : memref<1x64x32xf32, #tpu.memory_space<vmem>>, vector<1x64x32xf32>
    %216 = vector.shape_cast %215 : vector<1x64x32xf32> to vector<64x32xf32>
    %217 = vector.shape_cast %203 : vector<64x32xf32> to vector<1x64x32xf32>
    tpu.vector_store %arg6[%c0_132, %c0_133, %c0_134], %217 {strides = array<i32>} : memref<1x64x32xf32, #tpu.memory_space<vmem>>, vector<1x64x32xf32>,
    %c0_135 = arith.constant 0 : index
    %c0_136 = arith.constant 0 : index
    %c0_137 = arith.constant 0 : index
    %218 = vector.load %arg7[%c0_135, %c0_136, %c0_137] : memref<1x64x32xf32, #tpu.memory_space<vmem>>, vector<1x64x32xf32>
    %219 = vector.shape_cast %218 : vector<1x64x32xf32> to vector<64x32xf32>
    %220 = vector.shape_cast %214 : vector<64x32xf32> to vector<1x64x32xf32>
    tpu.vector_store %arg7[%c0_135, %c0_136, %c0_137], %220 {strides = array<i32>} : memref<1x64x32xf32, #tpu.memory_space<vmem>>, vector<1x64x32xf32>,
    return
  }
  func.func @transform_0(%arg0: i32) -> (i32, i32, i32) {
    %c0_i32 = arith.constant 0 : i32
    %c0_i32_0 = arith.constant 0 : i32
    %c0_i32_1 = arith.constant 0 : i32
    return %arg0, %c0_i32, %c0_i32_0 : i32, i32, i32
  }
  func.func @transform_1(%arg0: i32) -> (i32, i32, i32) {
    %c0_i32 = arith.constant 0 : i32
    %c0_i32_0 = arith.constant 0 : i32
    %c0_i32_1 = arith.constant 0 : i32
    return %arg0, %c0_i32, %c0_i32_0 : i32, i32, i32
  }
  func.func @transform_2(%arg0: i32) -> (i32, i32, i32) {
    %c0_i32 = arith.constant 0 : i32
    %c0_i32_0 = arith.constant 0 : i32
    %c0_i32_1 = arith.constant 0 : i32
    return %arg0, %c0_i32, %c0_i32_0 : i32, i32, i32
  }
  func.func @transform_3(%arg0: i32) -> (i32, i32, i32) {
    %c0_i32 = arith.constant 0 : i32
    %c0_i32_0 = arith.constant 0 : i32
    %c0_i32_1 = arith.constant 0 : i32
    %c0_i32_2 = arith.constant 0 : i32
    return %c0_i32, %c0_i32_0, %c0_i32_1 : i32, i32, i32
  }
  func.func @transform_4(%arg0: i32) -> (i32, i32, i32) {
    %c0_i32 = arith.constant 0 : i32
    %c0_i32_0 = arith.constant 0 : i32
    %c0_i32_1 = arith.constant 0 : i32
    %c0_i32_2 = arith.constant 0 : i32
    return %c0_i32, %c0_i32_0, %c0_i32_1 : i32, i32, i32
  }
  func.func @transform_5(%arg0: i32) -> (i32, i32, i32) {
    %c0_i32 = arith.constant 0 : i32
    %c0_i32_0 = arith.constant 0 : i32
    %c0_i32_1 = arith.constant 0 : i32
    return %arg0, %c0_i32, %c0_i32_0 : i32, i32, i32
  }
  func.func @transform_6(%arg0: i32) -> (i32, i32, i32) {
    %c0_i32 = arith.constant 0 : i32
    %c0_i32_0 = arith.constant 0 : i32
    %c0_i32_1 = arith.constant 0 : i32
    return %arg0, %c0_i32, %c0_i32_0 : i32, i32, i32
  }
}

</mosaic_0001>

<bundles_post_ra>
// kernel: mesh_deformation_block.1
= control target key start
LH: loop header
LB: loop body
LE: loop exit
PB: predicated region body
PF: predicated region fallthrough
CT: control target
= control target key end

     0   :  { %s2673_s21 = smov 0   ;;  %s3325_s0 = inlined_call_operand.vmem [shape: f32[2,64,16], index: 0, kind: input, shape index: {}]   ;;  %s3326_s1 = inlined_call_operand.vmem [shape: f32[2,64,48], index: 1, kind: input, shape index: {}]   ;;  %s3327_s2 = inlined_call_operand.vmem [shape: bf16[2,64,64], index: 2, kind: input, shape index: {}]   ;;  %s3328_s3 = inlined_call_operand.vmem [shape: bf16[14,64,32], index: 3, kind: input, shape index: {}]   ;;  %s3329_s4 = inlined_call_operand.vmem [shape: f32[14,1,32], index: 4, kind: input, shape index: {}]   ;;  %s3330_s5 = inlined_call_operand.vmem [shape: f32[2,64,32], index: 5, kind: output, shape index: {0}]   ;;  %s3331_s6 = inlined_call_operand.vmem [shape: f32[2,64,32], index: 6, kind: output, shape index: {1}]  }
   0x1 LB: > { %s2226_s22 = sadd.s32 4294967295, %s2635_s21   ;;  %p2230_p0 = scmp.ge.s32.totalorder %s2635_s21, 1  ;;  %s2635_s21 = sphi %s2673_s21, %s17_s21  }
   0x2   : > { %p235_p1 = scmp.lt.s32.totalorder %s2635_s21, 3 }
   0x4   : > { %p236_p2 = pnand %p2230_p0, %p235_p1 }
   0x5   : > { %p280_p3 = scmp.lt.s32.totalorder (!%p236_p2), %s2226_s22, 1  ;;  %s2637_s25 = smov (!%p236_p2), 16  }
   0x6   : > { %239 = sbr.rel (%p236_p2) target bundleno = 4932 (0x1344), region = 40 }
   0xb   : > { %v2572_v0 = vld [vmem:[%s3328_s3 + $0x18] sm:$0xff]  ;;  %v2569_v1 = vld [vmem:[%s3328_s3] sm:$0xff]  ;;  %v2571_v2 = vld [vmem:[%s3328_s3 + $0x10] sm:$0xff]  ;;  %s3333_s22 = smov (!%p280_p3, %s2226_s22), 1  ;;  %vm412_vm0 = vcmask 130048   ;;  %vm364_vm1 = vcmask 392192  }
   0xc   : > { %382 = vmatpush.bf16.msra.mxu0 %v2572_v0  ;;  %2599 = vmatpush.bf16.msra.mxu1 %v2569_v1  ;;  %s2693_s29 = sshll.u32 %s3333_s22, 6  ;;  %v2570_v3 = vld [vmem:[%s3328_s3 + $0x8] sm:$0xff]  ;;  %s2562_s14 = sshll.u32 %s3333_s22, 5  ;;  %vm482_vm2 = vcmask 523264   ;;  %v2573_v61 = vld [vmem:[%s3328_s3 + $0x20] sm:$0xff]  ;;  %vm555_vm3 = vcmask 261120  }
   0xd   : > { %2600 = vmatpush.bf16.msra.mxu2 %v2569_v1  ;;  %2601 = vmatpush.bf16.msra.mxu3 %v2569_v1  ;;  %s2699_s8 = scalar_lea.vmem %s3326_s1, %s2693_s29  ;;  %s2708_s13 = scalar_lea.vmem %s3325_s0, %s2693_s29  ;;  %v2574_v60 = vld [vmem:[%s3328_s3 + $0x28] sm:$0xff]  ;;  %v2611_v63 = vld [vmem:[%s3329_s4] ss:$0 sm:$0xff]  ;;  %vm681_vm4 = vcmask 261248  }
   0xe   : > { %v2711_v4 = vld [vmem:[%s2699_s8] sm:$0xff]  ;;  %v2714_v5 = vld [vmem:[%s2699_s8 + $0x8] sm:$0xff]  ;;  %v316_v6 = vld [vmem:[%s2708_s13 + $0x10] sm:$0xff]  ;;  %s2770_s17 = scalar_lea.vmem %s3327_s2, %s2562_s14  ;;  %s3270_s12 = scalar_lea.vmem %s3330_s5, %s2693_s29 }
   0xf   : > { %v342_v7 = vpack.c.bf16 %v2714_v5, %v2711_v4  ;;  %v317_v8 = vld [vmem:[%s2708_s13 + $0x18] sm:$0xff]  ;;  %643 = vst.msk [vmem:[#allocation2 + $0x10] sm:$0xff] %vm412_vm0, %v316_v6  ;;  %v318_v9 = vld [vmem:[%s2708_s13 + $0x20] sm:$0xff]  ;;  %v319_v10 = vld [vmem:[%s2708_s13 + $0x28] sm:$0xff]  ;;  %657 = vrot.lane.b32.xlu0 %v2711_v4, %s2637_s25  ;;  %s304_s18 = scalar_lea.vmem %s3331_s6, %s2693_s29 }
  0x10   : > { %383 = vmatpush.bf16.msra.mxu0 %v2571_v2  ;;  %v339_v11 = vpack.c.bf16 %v317_v8, %v316_v6  ;;  %644 = vst.msk [vmem:[#allocation2 + $0x18] sm:$0xff] %vm412_vm0, %v317_v8  ;;  %v340_v12 = vpack.c.bf16 %v319_v10, %v318_v9  ;;  %v320_v13 = vld [vmem:[%s2708_s13 + $0x30] sm:$0xff]  ;;  %v321_v14 = vld [vmem:[%s2708_s13 + $0x38] sm:$0xff]  ;;  %v314_v19 = vld [vmem:[%s2708_s13] sm:$0xff] }
  0x11   : > { %645 = vst.msk [vmem:[#allocation2 + $0x20] sm:$0xff] %vm412_vm0, %v318_v9  ;;  %v341_v15 = vpack.c.bf16 %v321_v14, %v320_v13  ;;  %v2735_v16 = vld [vmem:[%s2699_s8 + $0x10] sm:$0xff]  ;;  %v2738_v17 = vld [vmem:[%s2699_s8 + $0x18] sm:$0xff]  ;;  %v315_v20 = vld [vmem:[%s2708_s13 + $0x8] sm:$0xff]  ;;  %574 = vmatpush.bf16.msrb.mxu3 %v2574_v60 }
  0x12   : > { %2262 = vmatmul.msk.bf16.vlgmr.msra.gmra.mxu1 %vm412_vm0, %v339_v11  ;;  %2263 = vmatmul.msk.bf16.vlgmr.msra.gmra.mxu2 %vm412_vm0, %v340_v12  ;;  %646 = vst.msk [vmem:[#allocation2 + $0x28] sm:$0xff] %vm412_vm0, %v319_v10  ;;  %v343_v18 = vpack.c.bf16 %v2738_v17, %v2735_v16  ;;  %v2748_v21 = vld [vmem:[%s2699_s8 + $0x20] sm:$0xff]  ;;  %v2751_v22 = vld [vmem:[%s2699_s8 + $0x28] sm:$0xff]  ;;  %v2757_v24 = vld [vmem:[%s2699_s8 + $0x30] sm:$0xff]  ;;  %v338_v27 = vpack.c.bf16 %v315_v20, %v314_v19 }
  0x13   : > { %647 = vst.msk [vmem:[#allocation2 + $0x30] sm:$0xff] %vm412_vm0, %v320_v13  ;;  %2264 = vmatmul.msk.bf16.vlgmr.msra.gmra.mxu3 %vm412_vm0, %v341_v15  ;;  %v344_v23 = vpack.c.bf16 %v2751_v22, %v2748_v21  ;;  %v2760_v25 = vld [vmem:[%s2699_s8 + $0x38] sm:$0xff]  ;;  %v2773_v56 = vld [vmem:[%s2770_s17] sm:$0xff]  ;;  %v2778_v57 = vld [vmem:[%s2770_s17 + $0x8] sm:$0xff]  ;;  %661 = vrot.lane.b32.xlu1 %v2735_v16, %s2637_s25 }
  0x14   : > { %384 = vmatpush.bf16.msra.mxu0 %v2570_v3  ;;  %648 = vst.msk [vmem:[#allocation2 + $0x38] sm:$0xff] %vm412_vm0, %v321_v14  ;;  %v345_v26 = vpack.c.bf16 %v2760_v25, %v2757_v24  ;;  %v2783_v58 = vld [vmem:[%s2770_s17 + $0x10] sm:$0xff]  ;;  %v2788_v59 = vld [vmem:[%s2770_s17 + $0x18] sm:$0xff]  ;;  %665 = vrot.lane.b32.xlu2 %v2748_v21, %s2637_s25 }
  0x15   : > { %641 = vst.msk [vmem:[#allocation2] sm:$0xff] %vm412_vm0, %v314_v19  ;;  %575 = vmatpush.bf16.msrb.mxu3 %v2573_v61 }
  0x16   : > { %642 = vst.msk [vmem:[#allocation2 + $0x8] sm:$0xff] %vm412_vm0, %v315_v20 }
  0x17   : > { %2253 = vmatmul.msk.bf16.vlgmr.msra.gmra.mxu0 %vm364_vm1, %v342_v7  ;;  %659 = vrot.lane.b32.xlu0 %v2714_v5, %s2637_s25 }
  0x18   : > { %432 = vmatpush.bf16.msrb.mxu0 %v2569_v1 }
  0x1b   : > { %663 = vrot.lane.b32.xlu1 %v2738_v17, %s2637_s25 }
  0x1c   : > { %667 = vrot.lane.b32.xlu2 %v2751_v22, %s2637_s25 }
  0x1f   : > { %669 = vrot.lane.b32.xlu0 %v2757_v24, %s2637_s25 }
  0x23   : > { %671 = vrot.lane.b32.xlu1 %v2760_v25, %s2637_s25  ;;  %v2576_v25 = vld [vmem:[%s3328_s3 + $0x48] sm:$0xff] }
  0x24   : > { %755 = vmatpush.bf16.msra.mxu3 %v2576_v25 }
  0x27   : > { %2254 = vmatmul.msk.bf16.gmra.mxu0 %vm364_vm1, %v343_v18 }
  0x37   : > { %2255 = vmatmul.msk.bf16.gmra.mxu0 %vm364_vm1, %v344_v23 }
  0x47   : > { %2256 = vmatmul.msk.bf16.gmra.mxu0 %vm364_vm1, %v345_v26 }
  0x57   : > { %2261 = vmatmul.msk.bf16.vlgmr.msrb.gmra.mxu0 %vm412_vm0, %v338_v27 }
  0x81   : > { %v658_v22 = vpop.permute.xlu0 %657 }
  0x82   : > { %682 = vst.msk [vmem:[#allocation2] sm:$0xff] %vm681_vm4, %v658_v22 }
  0x89   : > { %v660_v24 = vpop.permute.xlu0 %659 }
  0x8a   : > { %683 = vst.msk [vmem:[#allocation2 + $0x8] sm:$0xff] %vm681_vm4, %v660_v24 }
  0x8f   : > { %v439_v37 = vpop.f32.mrf.mxu1 }
  0x91   : > { %v670_v61 = vpop.permute.xlu0 %669 }
  0x92   : > { %688 = vst.msk [vmem:[#allocation2 + $0x30] sm:$0xff] %vm681_vm4, %v670_v61  ;;  %v2613_v61 = vld [vmem:[%s3329_s4 + $0x2] ss:$0 sm:$0xff] }
  0x94   : > { %v386_v28 = vpop.f32.mrf.mxu0 }
  0x95   : > { %v444_v34 = vpop.f32.mrf.mxu2 }
  0x96   : > { %v449_v35 = vpop.f32.mrf.mxu3 }
  0x97   : > { %v441_v45 = vpop.f32.mrf.mxu1 }
  0x9c   : > { %v388_v29 = vpop.f32.mrf.mxu0 }
  0x9d   : > { %v446_v38 = vpop.f32.mrf.mxu2 }
  0x9e   : > { %v451_v39 = vpop.f32.mrf.mxu3 }
  0xa4   : > { %v391_v30 = vpop.f32.mrf.mxu0 }
  0xa5   : > { %v440_v50 = vadd.f32 %v439_v37, %v391_v30 }
  0xac   : > { %v393_v31 = vpop.f32.mrf.mxu0 }
  0xad   : > { %v442_v47 = vadd.f32 %v441_v45, %v393_v31  ;;  %v666_v45 = vpop.permute.xlu2 %665 }
  0xae   : > { %686 = vst.msk [vmem:[#allocation2 + $0x20] sm:$0xff] %vm681_vm4, %v666_v45 }
  0xaf   : > { %v455_v51 = vpack.c.bf16 %v442_v47, %v440_v50 }
  0xb4   : > { %v396_v32 = vpop.f32.mrf.mxu0 }
  0xb5   : > { %v445_v46 = vadd.f32 %v444_v34, %v396_v32 }
  0xbc   : > { %v398_v33 = vpop.f32.mrf.mxu0 }
  0xbd   : > { %v447_v43 = vadd.f32 %v446_v38, %v398_v33 }
  0xbf   : > { %v456_v48 = vpack.c.bf16 %v447_v43, %v445_v46  ;;  %v2575_v43 = vld [vmem:[%s3328_s3 + $0x40] sm:$0xff] }
  0xc0   : > { %756 = vmatpush.bf16.msra.mxu3 %v2575_v43  ;;  %v2612_v46 = vld [vmem:[%s3329_s4 + $0x1] ss:$0 sm:$0xff] }
  0xc4   : > { %v401_v36 = vpop.f32.mrf.mxu0 }
  0xc5   : > { %v450_v41 = vadd.f32 %v449_v35, %v401_v36 }
  0xcc   : > { %v403_v40 = vpop.f32.mrf.mxu0 }
  0xcd   : > { %v452_v42 = vadd.f32 %v451_v39, %v403_v40 }
  0xcf   : > { %v457_v44 = vpack.c.bf16 %v452_v42, %v450_v41  ;;  %v662_v42 = vpop.permute.xlu1 %661 }
  0xd0   : > { %684 = vst.msk [vmem:[#allocation2 + $0x10] sm:$0xff] %vm681_vm4, %v662_v42 }
  0xd1   : > { %499 = vmatpush.bf16.msrb.mxu2 %v457_v44 }
  0xd4   : > { %v434_v49 = vpop.f32.mrf.mxu0 }
  0xd5   : > { %500 = vmatpush.bf16.msrb.mxu2 %v456_v48  ;;  %v435_v53 = vadd.f32 %v434_v49, %v386_v28  ;;  %v668_v49 = vpop.permute.xlu2 %667 }
  0xd6   : > { %687 = vst.msk [vmem:[#allocation2 + $0x28] sm:$0xff] %vm681_vm4, %v668_v49 }
  0xd7   : > { %v664_v44 = vpop.permute.xlu1 %663 }
  0xd8   : > { %685 = vst.msk [vmem:[#allocation2 + $0x18] sm:$0xff] %vm681_vm4, %v664_v44 }
  0xd9   : > { %501 = vmatpush.bf16.msrb.mxu2 %v455_v51  ;;  %v690_v51 = vld [vmem:[#allocation2] sm:$0xff] }
  0xdc   : > { %v436_v52 = vpop.f32.mrf.mxu0 }
  0xdd   : > { %v437_v54 = vadd.f32 %v436_v52, %v388_v29 }
  0xdf   : > { %v454_v55 = vpack.c.bf16 %v437_v54, %v435_v53  ;;  %v691_v54 = vld [vmem:[#allocation2 + $0x8] sm:$0xff] }
  0xe1   : > { %502 = vmatpush.bf16.msrb.mxu2 %v454_v55 }
  0xe4   : > { %2281 = vmatmul.msk.bf16.vlgmr.msrb.gmra.mxu2 %vm482_vm2, %v2773_v56 }
  0xf4   : > { %2282 = vmatmul.msk.bf16.gmra.mxu2 %vm482_vm2, %v2778_v57 }
 0x104   : > { %2283 = vmatmul.msk.bf16.gmra.mxu2 %vm482_vm2, %v2783_v58 }
 0x114   : > { %2284 = vmatmul.msk.bf16.gmra.mxu2 %vm482_vm2, %v2788_v59 }
 0x167   : > { %v504_v62 = vpop.f32.mrf.mxu2 }
 0x168   : > { %v505_v0 = vadd.f32 %v2611_v63, %v504_v62 }
 0x16a   : > { %v524_v3 = vmax.f32 %v505_v0, 0.0 }
 0x16f   : > { %v506_v1 = vpop.f32.mrf.mxu2 }
 0x170   : > { %v507_v2 = vadd.f32 %v2611_v63, %v506_v1 }
 0x172   : > { %v525_v6 = vmax.f32 %v507_v2, 0.0 }
 0x174   : > { %v539_v7 = vpack.c.bf16 %v525_v6, %v524_v3  ;;  %v672_v6 = vpop.permute.xlu1 %671 }
 0x175   : > { %689 = vst.msk [vmem:[#allocation2 + $0x38] sm:$0xff] %vm681_vm4, %v672_v6 }
 0x176   : > { %2298 = vmatmul.msk.bf16.vlgmr.msrb.gmra.mxu3 %vm555_vm3, %v539_v7 }
 0x177   : > { %v509_v8 = vpop.f32.mrf.mxu2 }
 0x178   : > { %v510_v9 = vadd.f32 %v2611_v63, %v509_v8  ;;  %v692_v8 = vld [vmem:[#allocation2 + $0x10] sm:$0xff] }
 0x17a   : > { %v526_v12 = vmax.f32 %v510_v9, 0.0 }
 0x17f   : > { %v511_v10 = vpop.f32.mrf.mxu2 }
 0x180   : > { %v512_v11 = vadd.f32 %v2611_v63, %v511_v10 }
 0x182   : > { %v527_v13 = vmax.f32 %v512_v11, 0.0  ;;  %v693_v11 = vld [vmem:[#allocation2 + $0x18] sm:$0xff] }
 0x184   : > { %v540_v14 = vpack.c.bf16 %v527_v13, %v526_v12 }
 0x186   : > { %2299 = vmatmul.msk.bf16.gmra.mxu3 %vm555_vm3, %v540_v14 }
 0x187   : > { %v514_v15 = vpop.f32.mrf.mxu2 }
 0x188   : > { %v515_v18 = vadd.f32 %v2611_v63, %v514_v15 }
 0x18a   : > { %v528_v23 = vmax.f32 %v515_v18, 0.0 }
 0x18f   : > { %v516_v19 = vpop.f32.mrf.mxu2 }
 0x190   : > { %v517_v20 = vadd.f32 %v2611_v63, %v516_v19 }
 0x192   : > { %v529_v26 = vmax.f32 %v517_v20, 0.0 }
 0x194   : > { %v541_v27 = vpack.c.bf16 %v529_v26, %v528_v23 }
 0x196   : > { %2300 = vmatmul.msk.bf16.gmra.mxu3 %vm555_vm3, %v541_v27  ;;  %v694_v27 = vld [vmem:[#allocation2 + $0x20] sm:$0xff] }
 0x197   : > { %v519_v28 = vpop.f32.mrf.mxu2 }
 0x198   : > { %v520_v29 = vadd.f32 %v2611_v63, %v519_v28 }
 0x19a   : > { %v530_v32 = vmax.f32 %v520_v29, 0.0 }
 0x19f   : > { %v521_v30 = vpop.f32.mrf.mxu2 }
 0x1a0   : > { %v522_v31 = vadd.f32 %v2611_v63, %v521_v30  ;;  %v695_v30 = vld [vmem:[#allocation2 + $0x28] sm:$0xff] }
 0x1a2   : > { %v531_v33 = vmax.f32 %v522_v31, 0.0 }
 0x1a4   : > { %v542_v34 = vpack.c.bf16 %v531_v33, %v530_v32 }
 0x1a6   : > { %2301 = vmatmul.msk.bf16.gmra.mxu3 %vm555_vm3, %v542_v34 }
 0x1f9   : > { %v577_v35 = vpop.f32.mrf.mxu3 }
 0x201   : > { %v579_v36 = vpop.f32.mrf.mxu3 }
 0x202   : > { %v597_v17 = vpack.c.bf16 %v579_v36, %v577_v35 }
 0x209   : > { %v582_v37 = vpop.f32.mrf.mxu3 }
 0x211   : > { %v584_v38 = vpop.f32.mrf.mxu3 }
 0x212   : > { %v598_v5 = vpack.c.bf16 %v584_v38, %v582_v37 }
 0x219   : > { %v587_v39 = vpop.f32.mrf.mxu3 }
 0x221   : > { %v589_v4 = vpop.f32.mrf.mxu3 }
 0x222   : > { %v599_v21 = vpack.c.bf16 %v589_v4, %v587_v39  ;;  %v696_v4 = vld [vmem:[#allocation2 + $0x30] sm:$0xff] }
 0x229   : > { %v592_v40 = vpop.f32.mrf.mxu3 }
 0x231   : > { %v594_v16 = vpop.f32.mrf.mxu3 }
 0x232   : > { %v600_v41 = vpack.c.bf16 %v594_v16, %v592_v40 }
 0x234   : > { %608 = vmatpush.bf16.msrb.mxu1 %v600_v41  ;;  %v697_v41 = vld [vmem:[#allocation2 + $0x38] sm:$0xff] }
 0x238   : > { %609 = vmatpush.bf16.msrb.mxu1 %v599_v21 }
 0x23c   : > { %610 = vmatpush.bf16.msrb.mxu1 %v598_v5 }
 0x240   : > { %611 = vmatpush.bf16.msrb.mxu1 %v597_v17 }
 0x243   : > { %2302 = vmatmul.msk.bf16.vlgmr.msrb.gmra.mxu1 %vm482_vm2, %v2773_v56 }
 0x253   : > { %2303 = vmatmul.msk.bf16.gmra.mxu1 %vm482_vm2, %v2778_v57 }
 0x263   : > { %2304 = vmatmul.msk.bf16.gmra.mxu1 %vm482_vm2, %v2783_v58 }
 0x273   : > { %2305 = vmatmul.msk.bf16.gmra.mxu1 %vm482_vm2, %v2788_v59 }
 0x2c0   : > { %v613_v47 = vpop.f32.mrf.mxu1 }
 0x2c1   : > { %v614_v48 = vadd.f32 %v2612_v46, %v613_v47 }
 0x2c3   : > { %v633_v50 = vmax.f32 %v614_v48, 0.0 }
 0x2c5   : > { %v698_v55 = vadd.f32 %v690_v51, %v633_v50 }
 0x2c7   : > { %v2837_v63 = vmul.f32 0.5, %v698_v55  ;;  %v2577_v55 = vld [vmem:[%s3328_s3 + $0x60] sm:$0xff] }
 0x2c8   : > { %v615_v52 = vpop.f32.mrf.mxu1 }
 0x2c9   : > { %v616_v53 = vadd.f32 %v2612_v46, %v615_v52 }
 0x2cb   : > { %v634_v60 = vmax.f32 %v616_v53, 0.0 }
 0x2cd   : > { %v699_v62 = vadd.f32 %v691_v54, %v634_v60  ;;  %v2578_v54 = vld [vmem:[%s3328_s3 + $0x68] sm:$0xff] }
 0x2ce   : > { %863 = vmatpush.bf16.msra.mxu2 %v2578_v54 }
 0x2cf   : > { %v2839_v0 = vmul.f32 0.5, %v699_v62 }
 0x2d0   : > { %v618_v1 = vpop.f32.mrf.mxu1 }
 0x2d1   : > { %v721_v2 = vpack.c.bf16 %v2839_v0, %v2837_v63  ;;  %v619_v3 = vadd.f32 %v2612_v46, %v618_v1 }
 0x2d2   : > { %864 = vmatpush.bf16.msra.mxu2 %v2577_v55 }
 0x2d3   : > { %2319 = vmatmul.msk.bf16.vlgmr.msra.gmra.mxu3 %vm555_vm3, %v721_v2  ;;  %v635_v7 = vmax.f32 %v619_v3, 0.0 }
 0x2d5   : > { %v700_v12 = vadd.f32 %v692_v8, %v635_v7 }
 0x2d7   : > { %v2845_v15 = vmul.f32 0.5, %v700_v12 }
 0x2d8   : > { %v620_v9 = vpop.f32.mrf.mxu1 }
 0x2d9   : > { %v621_v10 = vadd.f32 %v2612_v46, %v620_v9 }
 0x2db   : > { %v636_v13 = vmax.f32 %v621_v10, 0.0 }
 0x2dd   : > { %v701_v14 = vadd.f32 %v693_v11, %v636_v13 }
 0x2df   : > { %v2847_v18 = vmul.f32 0.5, %v701_v14 }
 0x2e0   : > { %v623_v19 = vpop.f32.mrf.mxu1 }
 0x2e1   : > { %v722_v20 = vpack.c.bf16 %v2847_v18, %v2845_v15  ;;  %v624_v23 = vadd.f32 %v2612_v46, %v623_v19 }
 0x2e3   : > { %2320 = vmatmul.msk.bf16.gmra.mxu3 %vm555_vm3, %v722_v20  ;;  %v637_v26 = vmax.f32 %v624_v23, 0.0 }
 0x2e5   : > { %v702_v31 = vadd.f32 %v694_v27, %v637_v26 }
 0x2e7   : > { %v2852_v34 = vmul.f32 0.5, %v702_v31 }
 0x2e8   : > { %v625_v28 = vpop.f32.mrf.mxu1 }
 0x2e9   : > { %v626_v29 = vadd.f32 %v2612_v46, %v625_v28 }
 0x2eb   : > { %v638_v32 = vmax.f32 %v626_v29, 0.0 }
 0x2ed   : > { %v703_v33 = vadd.f32 %v695_v30, %v638_v32 }
 0x2ef   : > { %v2854_v35 = vmul.f32 0.5, %v703_v33 }
 0x2f0   : > { %v628_v36 = vpop.f32.mrf.mxu1 }
 0x2f1   : > { %v723_v37 = vpack.c.bf16 %v2854_v35, %v2852_v34  ;;  %v629_v38 = vadd.f32 %v2612_v46, %v628_v36 }
 0x2f3   : > { %2321 = vmatmul.msk.bf16.gmra.mxu3 %vm555_vm3, %v723_v37  ;;  %v639_v39 = vmax.f32 %v629_v38, 0.0 }
 0x2f5   : > { %v704_v21 = vadd.f32 %v696_v4, %v639_v39 }
 0x2f7   : > { %v2859_v22 = vmul.f32 0.5, %v704_v21 }
 0x2f8   : > { %v630_v40 = vpop.f32.mrf.mxu1 }
 0x2f9   : > { %v631_v16 = vadd.f32 %v2612_v46, %v630_v40 }
 0x2fb   : > { %v640_v5 = vmax.f32 %v631_v16, 0.0 }
 0x2fd   : > { %v705_v17 = vadd.f32 %v697_v41, %v640_v5 }
 0x2ff   : > { %v2861_v24 = vmul.f32 0.5, %v705_v17 }
 0x301   : > { %v724_v25 = vpack.c.bf16 %v2861_v24, %v2859_v22 }
 0x303   : > { %2322 = vmatmul.msk.bf16.gmra.mxu3 %vm555_vm3, %v724_v25 }
 0x356   : > { %v758_v42 = vpop.f32.mrf.mxu3 }
 0x35e   : > { %v760_v43 = vpop.f32.mrf.mxu3 }
 0x35f   : > { %v778_v53 = vpack.c.bf16 %v760_v43, %v758_v42 }
 0x366   : > { %v763_v44 = vpop.f32.mrf.mxu3 }
 0x36e   : > { %v765_v45 = vpop.f32.mrf.mxu3 }
 0x36f   : > { %v779_v52 = vpack.c.bf16 %v765_v45, %v763_v44  ;;  %v2580_v45 = vld [vmem:[%s3328_s3 + $0x88] sm:$0xff] }
 0x370   : > { %987 = vmatpush.bf16.msrb.mxu3 %v2580_v45  ;;  %v2581_v45 = vld [vmem:[%s3328_s3 + $0xa0] sm:$0xff] }
 0x376   : > { %v768_v47 = vpop.f32.mrf.mxu3 }
 0x37e   : > { %v770_v48 = vpop.f32.mrf.mxu3 }
 0x37f   : > { %v780_v51 = vpack.c.bf16 %v770_v48, %v768_v47  ;;  %v2579_v47 = vld [vmem:[%s3328_s3 + $0x80] sm:$0xff] }
 0x380   : > { %988 = vmatpush.bf16.msrb.mxu3 %v2579_v47  ;;  %v2614_v48 = vld [vmem:[%s3329_s4 + $0x3] ss:$0 sm:$0xff] }
 0x386   : > { %v773_v46 = vpop.f32.mrf.mxu3 }
 0x38e   : > { %v775_v49 = vpop.f32.mrf.mxu3 }
 0x38f   : > { %v781_v50 = vpack.c.bf16 %v775_v49, %v773_v46 }
 0x391   : > { %789 = vmatpush.bf16.msra.mxu0 %v781_v50 }
 0x395   : > { %790 = vmatpush.bf16.msra.mxu0 %v780_v51 }
 0x399   : > { %791 = vmatpush.bf16.msra.mxu0 %v779_v52 }
 0x39d   : > { %792 = vmatpush.bf16.msra.mxu0 %v778_v53 }
 0x3a0   : > { %2323 = vmatmul.msk.bf16.vlgmr.msra.gmra.mxu0 %vm482_vm2, %v2773_v56 }
 0x3b0   : > { %2324 = vmatmul.msk.bf16.gmra.mxu0 %vm482_vm2, %v2778_v57 }
 0x3c0   : > { %2325 = vmatmul.msk.bf16.gmra.mxu0 %vm482_vm2, %v2783_v58 }
 0x3d0   : > { %2326 = vmatmul.msk.bf16.gmra.mxu0 %vm482_vm2, %v2788_v59 }
 0x41d   : > { %v794_v60 = vpop.f32.mrf.mxu0 }
 0x41e   : > { %v795_v62 = vadd.f32 %v2613_v61, %v794_v60 }
 0x420   : > { %v814_v3 = vmax.f32 %v795_v62, 0.0 }
 0x425   : > { %v796_v1 = vpop.f32.mrf.mxu0 }
 0x426   : > { %v797_v2 = vadd.f32 %v2613_v61, %v796_v1 }
 0x428   : > { %v815_v6 = vmax.f32 %v797_v2, 0.0 }
 0x42a   : > { %v829_v7 = vpack.c.bf16 %v815_v6, %v814_v3 }
 0x42c   : > { %2340 = vmatmul.msk.bf16.vlgmr.msra.gmra.mxu2 %vm555_vm3, %v829_v7 }
 0x42d   : > { %v799_v8 = vpop.f32.mrf.mxu0 }
 0x42e   : > { %v800_v9 = vadd.f32 %v2613_v61, %v799_v8 }
 0x430   : > { %v816_v12 = vmax.f32 %v800_v9, 0.0 }
 0x435   : > { %v801_v10 = vpop.f32.mrf.mxu0 }
 0x436   : > { %v802_v11 = vadd.f32 %v2613_v61, %v801_v10 }
 0x438   : > { %v817_v13 = vmax.f32 %v802_v11, 0.0 }
 0x43a   : > { %v830_v14 = vpack.c.bf16 %v817_v13, %v816_v12 }
 0x43c   : > { %2341 = vmatmul.msk.bf16.gmra.mxu2 %vm555_vm3, %v830_v14 }
 0x43d   : > { %v804_v19 = vpop.f32.mrf.mxu0 }
 0x43e   : > { %v805_v20 = vadd.f32 %v2613_v61, %v804_v19 }
 0x440   : > { %v818_v27 = vmax.f32 %v805_v20, 0.0 }
 0x445   : > { %v806_v23 = vpop.f32.mrf.mxu0 }
 0x446   : > { %v807_v26 = vadd.f32 %v2613_v61, %v806_v23 }
 0x448   : > { %v819_v28 = vmax.f32 %v807_v26, 0.0 }
 0x44a   : > { %v831_v29 = vpack.c.bf16 %v819_v28, %v818_v27 }
 0x44c   : > { %2342 = vmatmul.msk.bf16.gmra.mxu2 %vm555_vm3, %v831_v29 }
 0x44d   : > { %v809_v30 = vpop.f32.mrf.mxu0 }
 0x44e   : > { %v810_v31 = vadd.f32 %v2613_v61, %v809_v30 }
 0x450   : > { %v820_v36 = vmax.f32 %v810_v31, 0.0 }
 0x455   : > { %v811_v32 = vpop.f32.mrf.mxu0 }
 0x456   : > { %v812_v33 = vadd.f32 %v2613_v61, %v811_v32 }
 0x458   : > { %v821_v37 = vmax.f32 %v812_v33, 0.0 }
 0x45a   : > { %v832_v38 = vpack.c.bf16 %v821_v37, %v820_v36 }
 0x45c   : > { %2343 = vmatmul.msk.bf16.gmra.mxu2 %vm555_vm3, %v832_v38 }
 0x4af   : > { %v866_v39 = vpop.f32.mrf.mxu2 }
 0x4b7   : > { %v868_v4 = vpop.f32.mrf.mxu2 }
 0x4b8   : > { %v886_v44 = vpack.c.bf16 %v868_v4, %v866_v39 }
 0x4bf   : > { %v871_v40 = vpop.f32.mrf.mxu2 }
 0x4c7   : > { %v873_v16 = vpop.f32.mrf.mxu2 }
 0x4c8   : > { %v887_v43 = vpack.c.bf16 %v873_v16, %v871_v40 }
 0x4cf   : > { %v876_v41 = vpop.f32.mrf.mxu2 }
 0x4d7   : > { %v878_v21 = vpop.f32.mrf.mxu2 }
 0x4d8   : > { %v888_v42 = vpack.c.bf16 %v878_v21, %v876_v41 }
 0x4df   : > { %v881_v5 = vpop.f32.mrf.mxu2 }
 0x4e7   : > { %v883_v17 = vpop.f32.mrf.mxu2 }
 0x4e8   : > { %v889_v25 = vpack.c.bf16 %v883_v17, %v881_v5 }
 0x4ea   : > { %897 = vmatpush.bf16.msra.mxu1 %v889_v25 }
 0x4ee   : > { %898 = vmatpush.bf16.msra.mxu1 %v888_v42 }
 0x4f2   : > { %899 = vmatpush.bf16.msra.mxu1 %v887_v43 }
 0x4f6   : > { %900 = vmatpush.bf16.msra.mxu1 %v886_v44  ;;  %v2582_v44 = vld [vmem:[%s3328_s3 + $0xa8] sm:$0xff] }
 0x4f7   : > { %1095 = vmatpush.bf16.msrb.mxu2 %v2582_v44 }
 0x4f9   : > { %2344 = vmatmul.msk.bf16.vlgmr.msra.gmra.mxu1 %vm482_vm2, %v2773_v56 }
 0x4fb   : > { %1096 = vmatpush.bf16.msrb.mxu2 %v2581_v45 }
 0x509   : > { %2345 = vmatmul.msk.bf16.gmra.mxu1 %vm482_vm2, %v2778_v57 }
 0x519   : > { %2346 = vmatmul.msk.bf16.gmra.mxu1 %vm482_vm2, %v2783_v58 }
 0x529   : > { %2347 = vmatmul.msk.bf16.gmra.mxu1 %vm482_vm2, %v2788_v59 }
 0x576   : > { %v902_v46 = vpop.f32.mrf.mxu1 }
 0x577   : > { %v903_v49 = vadd.f32 %v2614_v48, %v902_v46 }
 0x579   : > { %v922_v50 = vmax.f32 %v903_v49, 0.0 }
 0x57b   : > { %v930_v53 = vadd.f32 %v922_v50, %v2837_v63 }
 0x57d   : > { %v2906_v60 = vmul.f32 0.5, %v930_v53 }
 0x57e   : > { %v904_v51 = vpop.f32.mrf.mxu1 }
 0x57f   : > { %v905_v52 = vadd.f32 %v2614_v48, %v904_v51 }
 0x581   : > { %v923_v54 = vmax.f32 %v905_v52, 0.0 }
 0x583   : > { %v931_v55 = vadd.f32 %v923_v54, %v2839_v0 }
 0x585   : > { %v2908_v61 = vmul.f32 0.5, %v931_v55 }
 0x586   : > { %v907_v62 = vpop.f32.mrf.mxu1 }
 0x587   : > { %v953_v1 = vpack.c.bf16 %v2908_v61, %v2906_v60  ;;  %v908_v2 = vadd.f32 %v2614_v48, %v907_v62 }
 0x589   : > { %2361 = vmatmul.msk.bf16.vlgmr.msrb.gmra.mxu3 %vm555_vm3, %v953_v1  ;;  %v924_v3 = vmax.f32 %v908_v2, 0.0 }
 0x58b   : > { %v932_v8 = vadd.f32 %v924_v3, %v2845_v15 }
 0x58d   : > { %v2915_v0 = vmul.f32 0.5, %v932_v8 }
 0x58e   : > { %v909_v6 = vpop.f32.mrf.mxu1 }
 0x58f   : > { %v910_v7 = vadd.f32 %v2614_v48, %v909_v6 }
 0x591   : > { %v925_v63 = vmax.f32 %v910_v7, 0.0 }
 0x593   : > { %v933_v9 = vadd.f32 %v925_v63, %v2847_v18 }
 0x595   : > { %v2917_v10 = vmul.f32 0.5, %v933_v9 }
 0x596   : > { %v912_v11 = vpop.f32.mrf.mxu1 }
 0x597   : > { %v954_v12 = vpack.c.bf16 %v2917_v10, %v2915_v0  ;;  %v913_v13 = vadd.f32 %v2614_v48, %v912_v11 }
 0x599   : > { %2362 = vmatmul.msk.bf16.gmra.mxu3 %vm555_vm3, %v954_v12  ;;  %v926_v14 = vmax.f32 %v913_v13, 0.0 }
 0x59b   : > { %v934_v23 = vadd.f32 %v926_v14, %v2852_v34 }
 0x59d   : > { %v2924_v18 = vmul.f32 0.5, %v934_v23 }
 0x59e   : > { %v914_v19 = vpop.f32.mrf.mxu1 }
 0x59f   : > { %v915_v20 = vadd.f32 %v2614_v48, %v914_v19 }
 0x5a1   : > { %v927_v15 = vmax.f32 %v915_v20, 0.0 }
 0x5a3   : > { %v935_v26 = vadd.f32 %v927_v15, %v2854_v35 }
 0x5a5   : > { %v2926_v27 = vmul.f32 0.5, %v935_v26 }
 0x5a6   : > { %v917_v28 = vpop.f32.mrf.mxu1 }
 0x5a7   : > { %v955_v29 = vpack.c.bf16 %v2926_v27, %v2924_v18  ;;  %v918_v30 = vadd.f32 %v2614_v48, %v917_v28 }
 0x5a9   : > { %2363 = vmatmul.msk.bf16.gmra.mxu3 %vm555_vm3, %v955_v29  ;;  %v928_v31 = vmax.f32 %v918_v30, 0.0 }
 0x5ab   : > { %v936_v36 = vadd.f32 %v928_v31, %v2859_v22 }
 0x5ad   : > { %v2933_v35 = vmul.f32 0.5, %v936_v36 }
 0x5ae   : > { %v919_v32 = vpop.f32.mrf.mxu1 }
 0x5af   : > { %v920_v33 = vadd.f32 %v2614_v48, %v919_v32  ;;  %v2615_v48 = vld [vmem:[%s3329_s4 + $0x4] ss:$0 sm:$0xff] }
 0x5b1   : > { %v929_v34 = vmax.f32 %v920_v33, 0.0 }
 0x5b3   : > { %v937_v37 = vadd.f32 %v929_v34, %v2861_v24 }
 0x5b5   : > { %v2935_v38 = vmul.f32 0.5, %v937_v37 }
 0x5b7   : > { %v956_v39 = vpack.c.bf16 %v2935_v38, %v2933_v35 }
 0x5b9   : > { %2364 = vmatmul.msk.bf16.gmra.mxu3 %vm555_vm3, %v956_v39 }
 0x60c   : > { %v990_v4 = vpop.f32.mrf.mxu3 }
 0x614   : > { %v992_v40 = vpop.f32.mrf.mxu3 }
 0x615   : > { %v1010_v43 = vpack.c.bf16 %v992_v40, %v990_v4 }
 0x61c   : > { %v995_v16 = vpop.f32.mrf.mxu3 }
 0x624   : > { %v997_v41 = vpop.f32.mrf.mxu3 }
 0x625   : > { %v1011_v42 = vpack.c.bf16 %v997_v41, %v995_v16  ;;  %v2584_v41 = vld [vmem:[%s3328_s3 + $0xc8] sm:$0xff] }
 0x626   : > { %1219 = vmatpush.bf16.msra.mxu3 %v2584_v41  ;;  %v2585_v41 = vld [vmem:[%s3328_s3 + $0xe0] sm:$0xff] }
 0x62c   : > { %v1000_v21 = vpop.f32.mrf.mxu3 }
 0x634   : > { %v1002_v5 = vpop.f32.mrf.mxu3 }
 0x635   : > { %v1012_v24 = vpack.c.bf16 %v1002_v5, %v1000_v21  ;;  %v2583_v21 = vld [vmem:[%s3328_s3 + $0xc0] sm:$0xff] }
 0x636   : > { %1220 = vmatpush.bf16.msra.mxu3 %v2583_v21  ;;  %v2616_v5 = vld [vmem:[%s3329_s4 + $0x5] ss:$0 sm:$0xff] }
 0x63c   : > { %v1005_v17 = vpop.f32.mrf.mxu3 }
 0x644   : > { %v1007_v22 = vpop.f32.mrf.mxu3 }
 0x645   : > { %v1013_v25 = vpack.c.bf16 %v1007_v22, %v1005_v17 }
 0x647   : > { %1021 = vmatpush.bf16.msrb.mxu0 %v1013_v25 }
 0x64b   : > { %1022 = vmatpush.bf16.msrb.mxu0 %v1012_v24 }
 0x64f   : > { %1023 = vmatpush.bf16.msrb.mxu0 %v1011_v42 }
 0x653   : > { %1024 = vmatpush.bf16.msrb.mxu0 %v1010_v43 }
 0x656   : > { %2365 = vmatmul.msk.bf16.vlgmr.msrb.gmra.mxu0 %vm482_vm2, %v2773_v56 }
 0x666   : > { %2366 = vmatmul.msk.bf16.gmra.mxu0 %vm482_vm2, %v2778_v57 }
 0x676   : > { %2367 = vmatmul.msk.bf16.gmra.mxu0 %vm482_vm2, %v2783_v58 }
 0x686   : > { %2368 = vmatmul.msk.bf16.gmra.mxu0 %vm482_vm2, %v2788_v59 }
 0x6d3   : > { %v1026_v47 = vpop.f32.mrf.mxu0 }
 0x6d4   : > { %v1027_v46 = vadd.f32 %v2615_v48, %v1026_v47 }
 0x6d6   : > { %v1046_v51 = vmax.f32 %v1027_v46, 0.0 }
 0x6db   : > { %v1028_v49 = vpop.f32.mrf.mxu0 }
 0x6dc   : > { %v1029_v50 = vadd.f32 %v2615_v48, %v1028_v49 }
 0x6de   : > { %v1047_v52 = vmax.f32 %v1029_v50, 0.0 }
 0x6e0   : > { %v1061_v53 = vpack.c.bf16 %v1047_v52, %v1046_v51 }
 0x6e2   : > { %2382 = vmatmul.msk.bf16.vlgmr.msrb.gmra.mxu2 %vm555_vm3, %v1061_v53 }
 0x6e3   : > { %v1031_v54 = vpop.f32.mrf.mxu0 }
 0x6e4   : > { %v1032_v55 = vadd.f32 %v2615_v48, %v1031_v54 }
 0x6e6   : > { %v1048_v2 = vmax.f32 %v1032_v55, 0.0 }
 0x6eb   : > { %v1033_v62 = vpop.f32.mrf.mxu0 }
 0x6ec   : > { %v1034_v1 = vadd.f32 %v2615_v48, %v1033_v62 }
 0x6ee   : > { %v1049_v3 = vmax.f32 %v1034_v1, 0.0 }
 0x6f0   : > { %v1062_v6 = vpack.c.bf16 %v1049_v3, %v1048_v2 }
 0x6f2   : > { %2383 = vmatmul.msk.bf16.gmra.mxu2 %vm555_vm3, %v1062_v6 }
 0x6f3   : > { %v1036_v7 = vpop.f32.mrf.mxu0 }
 0x6f4   : > { %v1037_v8 = vadd.f32 %v2615_v48, %v1036_v7 }
 0x6f6   : > { %v1050_v11 = vmax.f32 %v1037_v8, 0.0 }
 0x6fb   : > { %v1038_v63 = vpop.f32.mrf.mxu0 }
 0x6fc   : > { %v1039_v9 = vadd.f32 %v2615_v48, %v1038_v63 }
 0x6fe   : > { %v1051_v12 = vmax.f32 %v1039_v9, 0.0 }
 0x700   : > { %v1063_v13 = vpack.c.bf16 %v1051_v12, %v1050_v11 }
 0x702   : > { %2384 = vmatmul.msk.bf16.gmra.mxu2 %vm555_vm3, %v1063_v13 }
 0x703   : > { %v1041_v14 = vpop.f32.mrf.mxu0 }
 0x704   : > { %v1042_v19 = vadd.f32 %v2615_v48, %v1041_v14 }
 0x706   : > { %v1052_v15 = vmax.f32 %v1042_v19, 0.0 }
 0x70b   : > { %v1043_v20 = vpop.f32.mrf.mxu0 }
 0x70c   : > { %v1044_v23 = vadd.f32 %v2615_v48, %v1043_v20 }
 0x70e   : > { %v1053_v26 = vmax.f32 %v1044_v23, 0.0 }
 0x710   : > { %v1064_v28 = vpack.c.bf16 %v1053_v26, %v1052_v15 }
 0x712   : > { %2385 = vmatmul.msk.bf16.gmra.mxu2 %vm555_vm3, %v1064_v28 }
 0x765   : > { %v1098_v29 = vpop.f32.mrf.mxu2 }
 0x76d   : > { %v1100_v30 = vpop.f32.mrf.mxu2 }
 0x76e   : > { %v1118_v16 = vpack.c.bf16 %v1100_v30, %v1098_v29 }
 0x775   : > { %v1103_v31 = vpop.f32.mrf.mxu2 }
 0x77d   : > { %v1105_v32 = vpop.f32.mrf.mxu2 }
 0x77e   : > { %v1119_v40 = vpack.c.bf16 %v1105_v32, %v1103_v31 }
 0x785   : > { %v1108_v33 = vpop.f32.mrf.mxu2 }
 0x78d   : > { %v1110_v36 = vpop.f32.mrf.mxu2 }
 0x78e   : > { %v1120_v4 = vpack.c.bf16 %v1110_v36, %v1108_v33 }
 0x795   : > { %v1113_v34 = vpop.f32.mrf.mxu2 }
 0x79d   : > { %v1115_v37 = vpop.f32.mrf.mxu2 }
 0x79e   : > { %v1121_v39 = vpack.c.bf16 %v1115_v37, %v1113_v34 }
 0x7a0   : > { %1129 = vmatpush.bf16.msrb.mxu1 %v1121_v39 }
 0x7a4   : > { %1130 = vmatpush.bf16.msrb.mxu1 %v1120_v4 }
 0x7a8   : > { %1131 = vmatpush.bf16.msrb.mxu1 %v1119_v40 }
 0x7ac   : > { %1132 = vmatpush.bf16.msrb.mxu1 %v1118_v16  ;;  %v2586_v16 = vld [vmem:[%s3328_s3 + $0xe8] sm:$0xff] }
 0x7ad   : > { %1327 = vmatpush.bf16.msra.mxu2 %v2586_v16 }
 0x7af   : > { %2386 = vmatmul.msk.bf16.vlgmr.msrb.gmra.mxu1 %vm482_vm2, %v2773_v56 }
 0x7b1   : > { %1328 = vmatpush.bf16.msra.mxu2 %v2585_v41 }
 0x7bf   : > { %2387 = vmatmul.msk.bf16.gmra.mxu1 %vm482_vm2, %v2778_v57 }
 0x7cf   : > { %2388 = vmatmul.msk.bf16.gmra.mxu1 %vm482_vm2, %v2783_v58 }
 0x7df   : > { %2389 = vmatmul.msk.bf16.gmra.mxu1 %vm482_vm2, %v2788_v59 }
 0x82c   : > { %v1134_v17 = vpop.f32.mrf.mxu1 }
 0x82d   : > { %v1135_v22 = vadd.f32 %v2616_v5, %v1134_v17 }
 0x82f   : > { %v1154_v25 = vmax.f32 %v1135_v22, 0.0 }
 0x831   : > { %v1162_v43 = vadd.f32 %v1154_v25, %v2906_v60 }
 0x833   : > { %v2980_v47 = vmul.f32 0.5, %v1162_v43 }
 0x834   : > { %v1136_v24 = vpop.f32.mrf.mxu1 }
 0x835   : > { %v1137_v42 = vadd.f32 %v2616_v5, %v1136_v24 }
 0x837   : > { %v1155_v44 = vmax.f32 %v1137_v42, 0.0 }
 0x839   : > { %v1163_v45 = vadd.f32 %v1155_v44, %v2908_v61 }
 0x83b   : > { %v2982_v48 = vmul.f32 0.5, %v1163_v45 }
 0x83c   : > { %v1139_v46 = vpop.f32.mrf.mxu1 }
 0x83d   : > { %v1185_v49 = vpack.c.bf16 %v2982_v48, %v2980_v47  ;;  %v1140_v50 = vadd.f32 %v2616_v5, %v1139_v46 }
 0x83f   : > { %2403 = vmatmul.msk.bf16.vlgmr.msra.gmra.mxu3 %vm555_vm3, %v1185_v49  ;;  %v1156_v51 = vmax.f32 %v1140_v50, 0.0 }
 0x841   : > { %v1164_v54 = vadd.f32 %v1156_v51, %v2915_v0 }
 0x843   : > { %v2989_v61 = vmul.f32 0.5, %v1164_v54 }
 0x844   : > { %v1141_v52 = vpop.f32.mrf.mxu1 }
 0x845   : > { %v1142_v53 = vadd.f32 %v2616_v5, %v1141_v52 }
 0x847   : > { %v1157_v60 = vmax.f32 %v1142_v53, 0.0 }
 0x849   : > { %v1165_v55 = vadd.f32 %v1157_v60, %v2917_v10 }
 0x84b   : > { %v2991_v62 = vmul.f32 0.5, %v1165_v55 }
 0x84c   : > { %v1144_v1 = vpop.f32.mrf.mxu1 }
 0x84d   : > { %v1186_v2 = vpack.c.bf16 %v2991_v62, %v2989_v61  ;;  %v1145_v3 = vadd.f32 %v2616_v5, %v1144_v1 }
 0x84f   : > { %2404 = vmatmul.msk.bf16.gmra.mxu3 %vm555_vm3, %v1186_v2  ;;  %v1158_v6 = vmax.f32 %v1145_v3, 0.0 }
 0x851   : > { %v1166_v63 = vadd.f32 %v1158_v6, %v2924_v18 }
 0x853   : > { %v2998_v10 = vmul.f32 0.5, %v1166_v63 }
 0x854   : > { %v1146_v7 = vpop.f32.mrf.mxu1 }
 0x855   : > { %v1147_v8 = vadd.f32 %v2616_v5, %v1146_v7 }
 0x857   : > { %v1159_v0 = vmax.f32 %v1147_v8, 0.0 }
 0x859   : > { %v1167_v9 = vadd.f32 %v1159_v0, %v2926_v27 }
 0x85b   : > { %v3000_v11 = vmul.f32 0.5, %v1167_v9 }
 0x85c   : > { %v1149_v12 = vpop.f32.mrf.mxu1 }
 0x85d   : > { %v1187_v13 = vpack.c.bf16 %v3000_v11, %v2998_v10  ;;  %v1150_v14 = vadd.f32 %v2616_v5, %v1149_v12 }
 0x85f   : > { %2405 = vmatmul.msk.bf16.gmra.mxu3 %vm555_vm3, %v1187_v13  ;;  %v1160_v19 = vmax.f32 %v1150_v14, 0.0 }
 0x861   : > { %v1168_v15 = vadd.f32 %v1160_v19, %v2933_v35 }
 0x863   : > { %v3007_v27 = vmul.f32 0.5, %v1168_v15 }
 0x864   : > { %v1151_v20 = vpop.f32.mrf.mxu1 }
 0x865   : > { %v1152_v23 = vadd.f32 %v2616_v5, %v1151_v20  ;;  %v2617_v5 = vld [vmem:[%s3329_s4 + $0x6] ss:$0 sm:$0xff] }
 0x867   : > { %v1161_v18 = vmax.f32 %v1152_v23, 0.0 }
 0x869   : > { %v1169_v26 = vadd.f32 %v1161_v18, %v2935_v38 }
 0x86b   : > { %v3009_v28 = vmul.f32 0.5, %v1169_v26 }
 0x86d   : > { %v1188_v29 = vpack.c.bf16 %v3009_v28, %v3007_v27 }
 0x86f   : > { %2406 = vmatmul.msk.bf16.gmra.mxu3 %vm555_vm3, %v1188_v29 }
 0x8c2   : > { %v1222_v30 = vpop.f32.mrf.mxu3 }
 0x8ca   : > { %v1224_v31 = vpop.f32.mrf.mxu3 }
 0x8cb   : > { %v1242_v40 = vpack.c.bf16 %v1224_v31, %v1222_v30 }
 0x8d2   : > { %v1227_v32 = vpop.f32.mrf.mxu3 }
 0x8da   : > { %v1229_v33 = vpop.f32.mrf.mxu3 }
 0x8db   : > { %v1243_v4 = vpack.c.bf16 %v1229_v33, %v1227_v32  ;;  %v2588_v33 = vld [vmem:[%s3328_s3 + $0x108] sm:$0xff] }
 0x8dc   : > { %1451 = vmatpush.bf16.msrb.mxu3 %v2588_v33  ;;  %v2589_v33 = vld [vmem:[%s3328_s3 + $0x120] sm:$0xff] }
 0x8e2   : > { %v1232_v36 = vpop.f32.mrf.mxu3 }
 0x8ea   : > { %v1234_v34 = vpop.f32.mrf.mxu3 }
 0x8eb   : > { %v1244_v38 = vpack.c.bf16 %v1234_v34, %v1232_v36  ;;  %v2587_v36 = vld [vmem:[%s3328_s3 + $0x100] sm:$0xff] }
 0x8ec   : > { %1452 = vmatpush.bf16.msrb.mxu3 %v2587_v36 }
 0x8f2   : > { %v1237_v37 = vpop.f32.mrf.mxu3 }
 0x8fa   : > { %v1239_v35 = vpop.f32.mrf.mxu3 }
 0x8fb   : > { %v1245_v39 = vpack.c.bf16 %v1239_v35, %v1237_v37 }
 0x8fd   : > { %1253 = vmatpush.bf16.msra.mxu0 %v1245_v39 }
 0x901   : > { %1254 = vmatpush.bf16.msra.mxu0 %v1244_v38 }
 0x905   : > { %1255 = vmatpush.bf16.msra.mxu0 %v1243_v4 }
 0x909   : > { %1256 = vmatpush.bf16.msra.mxu0 %v1242_v40 }
 0x90c   : > { %2407 = vmatmul.msk.bf16.vlgmr.msra.gmra.mxu0 %vm482_vm2, %v2773_v56 }
 0x91c   : > { %2408 = vmatmul.msk.bf16.gmra.mxu0 %vm482_vm2, %v2778_v57 }
 0x92c   : > { %2409 = vmatmul.msk.bf16.gmra.mxu0 %vm482_vm2, %v2783_v58 }
 0x93c   : > { %2410 = vmatmul.msk.bf16.gmra.mxu0 %vm482_vm2, %v2788_v59 }
 0x989   : > { %v1258_v21 = vpop.f32.mrf.mxu0 }
 0x98a   : > { %v1259_v17 = vadd.f32 %v2617_v5, %v1258_v21 }
 0x98c   : > { %v1278_v24 = vmax.f32 %v1259_v17, 0.0 }
 0x991   : > { %v1260_v22 = vpop.f32.mrf.mxu0 }
 0x992   : > { %v1261_v25 = vadd.f32 %v2617_v5, %v1260_v22 }
 0x994   : > { %v1279_v42 = vmax.f32 %v1261_v25, 0.0 }
 0x996   : > { %v1293_v43 = vpack.c.bf16 %v1279_v42, %v1278_v24 }
 0x998   : > { %2424 = vmatmul.msk.bf16.vlgmr.msra.gmra.mxu2 %vm555_vm3, %v1293_v43 }
 0x999   : > { %v1263_v44 = vpop.f32.mrf.mxu0 }
 0x99a   : > { %v1264_v45 = vadd.f32 %v2617_v5, %v1263_v44 }
 0x99c   : > { %v1280_v50 = vmax.f32 %v1264_v45, 0.0 }
 0x9a1   : > { %v1265_v46 = vpop.f32.mrf.mxu0 }
 0x9a2   : > { %v1266_v49 = vadd.f32 %v2617_v5, %v1265_v46 }
 0x9a4   : > { %v1281_v51 = vmax.f32 %v1266_v49, 0.0 }
 0x9a6   : > { %v1294_v52 = vpack.c.bf16 %v1281_v51, %v1280_v50 }
 0x9a8   : > { %2425 = vmatmul.msk.bf16.gmra.mxu2 %vm555_vm3, %v1294_v52 }
 0x9a9   : > { %v1268_v53 = vpop.f32.mrf.mxu0 }
 0x9aa   : > { %v1269_v54 = vadd.f32 %v2617_v5, %v1268_v53 }
 0x9ac   : > { %v1282_v1 = vmax.f32 %v1269_v54, 0.0 }
 0x9b1   : > { %v1270_v60 = vpop.f32.mrf.mxu0 }
 0x9b2   : > { %v1271_v55 = vadd.f32 %v2617_v5, %v1270_v60 }
 0x9b4   : > { %v1283_v2 = vmax.f32 %v1271_v55, 0.0 }
 0x9b6   : > { %v1295_v3 = vpack.c.bf16 %v1283_v2, %v1282_v1 }
 0x9b8   : > { %2426 = vmatmul.msk.bf16.gmra.mxu2 %vm555_vm3, %v1295_v3 }
 0x9b9   : > { %v1273_v6 = vpop.f32.mrf.mxu0 }
 0x9ba   : > { %v1274_v7 = vadd.f32 %v2617_v5, %v1273_v6 }
 0x9bc   : > { %v1284_v0 = vmax.f32 %v1274_v7, 0.0 }
 0x9c1   : > { %v1275_v8 = vpop.f32.mrf.mxu0 }
 0x9c2   : > { %v1276_v63 = vadd.f32 %v2617_v5, %v1275_v8 }
 0x9c4   : > { %v1285_v9 = vmax.f32 %v1276_v63, 0.0 }
 0x9c6   : > { %v1296_v12 = vpack.c.bf16 %v1285_v9, %v1284_v0 }
 0x9c8   : > { %2427 = vmatmul.msk.bf16.gmra.mxu2 %vm555_vm3, %v1296_v12 }
 0xa1b   : > { %v1330_v13 = vpop.f32.mrf.mxu2 }
 0xa23   : > { %v1332_v14 = vpop.f32.mrf.mxu2 }
 0xa24   : > { %v1350_v32 = vpack.c.bf16 %v1332_v14, %v1330_v13 }
 0xa2b   : > { %v1335_v19 = vpop.f32.mrf.mxu2 }
 0xa33   : > { %v1337_v20 = vpop.f32.mrf.mxu2 }
 0xa34   : > { %v1351_v31 = vpack.c.bf16 %v1337_v20, %v1335_v19 }
 0xa3b   : > { %v1340_v23 = vpop.f32.mrf.mxu2 }
 0xa43   : > { %v1342_v15 = vpop.f32.mrf.mxu2 }
 0xa44   : > { %v1352_v30 = vpack.c.bf16 %v1342_v15, %v1340_v23 }
 0xa4b   : > { %v1345_v18 = vpop.f32.mrf.mxu2 }
 0xa53   : > { %v1347_v26 = vpop.f32.mrf.mxu2 }
 0xa54   : > { %v1353_v29 = vpack.c.bf16 %v1347_v26, %v1345_v18  ;;  %v3089_v26 = vld [vmem:[%s2770_s17] sm:$0xff] }
 0xa56   : > { %1361 = vmatpush.bf16.msra.mxu1 %v1353_v29  ;;  %v3094_v29 = vld [vmem:[%s2770_s17 + $0x8] sm:$0xff] }
 0xa5a   : > { %1362 = vmatpush.bf16.msra.mxu1 %v1352_v30  ;;  %v3099_v30 = vld [vmem:[%s2770_s17 + $0x10] sm:$0xff] }
 0xa5e   : > { %1363 = vmatpush.bf16.msra.mxu1 %v1351_v31  ;;  %v3104_v31 = vld [vmem:[%s2770_s17 + $0x18] sm:$0xff] }
 0xa62   : > { %1364 = vmatpush.bf16.msra.mxu1 %v1350_v32  ;;  %v2590_v32 = vld [vmem:[%s3328_s3 + $0x128] sm:$0xff] }
 0xa63   : > { %1559 = vmatpush.bf16.msrb.mxu2 %v2590_v32 }
 0xa65   : > { %2428 = vmatmul.msk.bf16.vlgmr.msra.gmra.mxu1 %vm482_vm2, %v2773_v56  ;;  %v2618_v56 = vld [vmem:[%s3329_s4 + $0x7] ss:$0 sm:$0xff] }
 0xa67   : > { %1560 = vmatpush.bf16.msrb.mxu2 %v2589_v33 }
 0xa75   : > { %2429 = vmatmul.msk.bf16.gmra.mxu1 %vm482_vm2, %v2778_v57 }
 0xa85   : > { %2430 = vmatmul.msk.bf16.gmra.mxu1 %vm482_vm2, %v2783_v58 }
 0xa95   : > { %2431 = vmatmul.msk.bf16.gmra.mxu1 %vm482_vm2, %v2788_v59 }
 0xae2   : > { %v1366_v57 = vpop.f32.mrf.mxu1 }
 0xae3   : > { %v1367_v34 = vadd.f32 %v2618_v56, %v1366_v57 }
 0xae5   : > { %v1386_v58 = vmax.f32 %v1367_v34, 0.0 }
 0xae7   : > { %v1394_v59 = vadd.f32 %v1386_v58, %v2980_v47 }
 0xae9   : > { %v3054_v4 = vmul.f32 0.5, %v1394_v59 }
 0xaea   : > { %v1368_v37 = vpop.f32.mrf.mxu1 }
 0xaeb   : > { %v1369_v35 = vadd.f32 %v2618_v56, %v1368_v37 }
 0xaed   : > { %v1387_v39 = vmax.f32 %v1369_v35, 0.0 }
 0xaef   : > { %v1395_v38 = vadd.f32 %v1387_v39, %v2982_v48 }
 0xaf1   : > { %v3056_v40 = vmul.f32 0.5, %v1395_v38 }
 0xaf2   : > { %v1371_v16 = vpop.f32.mrf.mxu1 }
 0xaf3   : > { %v1417_v41 = vpack.c.bf16 %v3056_v40, %v3054_v4  ;;  %v1372_v21 = vadd.f32 %v2618_v56, %v1371_v16 }
 0xaf5   : > { %2445 = vmatmul.msk.bf16.vlgmr.msrb.gmra.mxu3 %vm555_vm3, %v1417_v41  ;;  %v1388_v5 = vmax.f32 %v1372_v21, 0.0 }
 0xaf7   : > { %v1396_v25 = vadd.f32 %v1388_v5, %v2989_v61 }
 0xaf9   : > { %v3063_v48 = vmul.f32 0.5, %v1396_v25 }
 0xafa   : > { %v1373_v17 = vpop.f32.mrf.mxu1 }
 0xafb   : > { %v1374_v22 = vadd.f32 %v2618_v56, %v1373_v17 }
 0xafd   : > { %v1389_v47 = vmax.f32 %v1374_v22, 0.0 }
 0xaff   : > { %v1397_v24 = vadd.f32 %v1389_v47, %v2991_v62 }
 0xb01   : > { %v3065_v42 = vmul.f32 0.5, %v1397_v24 }
 0xb02   : > { %v1376_v43 = vpop.f32.mrf.mxu1 }
 0xb03   : > { %v1418_v44 = vpack.c.bf16 %v3065_v42, %v3063_v48  ;;  %v1377_v45 = vadd.f32 %v2618_v56, %v1376_v43 }
 0xb05   : > { %2446 = vmatmul.msk.bf16.gmra.mxu3 %vm555_vm3, %v1418_v44  ;;  %v1390_v46 = vmax.f32 %v1377_v45, 0.0 }
 0xb07   : > { %v1398_v51 = vadd.f32 %v1390_v46, %v2998_v10 }
 0xb09   : > { %v3072_v62 = vmul.f32 0.5, %v1398_v51 }
 0xb0a   : > { %v1378_v49 = vpop.f32.mrf.mxu1 }
 0xb0b   : > { %v1379_v50 = vadd.f32 %v2618_v56, %v1378_v49 }
 0xb0d   : > { %v1391_v61 = vmax.f32 %v1379_v50, 0.0 }
 0xb0f   : > { %v1399_v52 = vadd.f32 %v1391_v61, %v3000_v11 }
 0xb11   : > { %v3074_v53 = vmul.f32 0.5, %v1399_v52 }
 0xb12   : > { %v1381_v54 = vpop.f32.mrf.mxu1 }
 0xb13   : > { %v1419_v60 = vpack.c.bf16 %v3074_v53, %v3072_v62  ;;  %v1382_v55 = vadd.f32 %v2618_v56, %v1381_v54 }
 0xb15   : > { %2447 = vmatmul.msk.bf16.gmra.mxu3 %vm555_vm3, %v1419_v60  ;;  %v1392_v1 = vmax.f32 %v1382_v55, 0.0 }
 0xb17   : > { %v1400_v6 = vadd.f32 %v1392_v1, %v3007_v27 }
 0xb19   : > { %v3081_v11 = vmul.f32 0.5, %v1400_v6 }
 0xb1a   : > { %v1383_v2 = vpop.f32.mrf.mxu1 }
 0xb1b   : > { %v1384_v3 = vadd.f32 %v2618_v56, %v1383_v2  ;;  %v2619_v56 = vld [vmem:[%s3329_s4 + $0x8] ss:$0 sm:$0xff] }
 0xb1d   : > { %v1393_v10 = vmax.f32 %v1384_v3, 0.0 }
 0xb1f   : > { %v1401_v7 = vadd.f32 %v1393_v10, %v3009_v28 }
 0xb21   : > { %v3083_v8 = vmul.f32 0.5, %v1401_v7 }
 0xb23   : > { %v1420_v63 = vpack.c.bf16 %v3083_v8, %v3081_v11 }
 0xb25   : > { %2448 = vmatmul.msk.bf16.gmra.mxu3 %vm555_vm3, %v1420_v63 }
 0xb78   : > { %v1454_v0 = vpop.f32.mrf.mxu3 }
 0xb80   : > { %v1456_v9 = vpop.f32.mrf.mxu3 }
 0xb81   : > { %v1474_v18 = vpack.c.bf16 %v1456_v9, %v1454_v0 }
 0xb88   : > { %v1459_v12 = vpop.f32.mrf.mxu3 }
 0xb90   : > { %v1461_v13 = vpop.f32.mrf.mxu3 }
 0xb91   : > { %v1475_v15 = vpack.c.bf16 %v1461_v13, %v1459_v12  ;;  %v2592_v13 = vld [vmem:[%s3328_s3 + $0x148] sm:$0xff] }
 0xb92   : > { %1683 = vmatpush.bf16.msra.mxu3 %v2592_v13  ;;  %v2593_v13 = vld [vmem:[%s3328_s3 + $0x160] sm:$0xff] }
 0xb98   : > { %v1464_v14 = vpop.f32.mrf.mxu3 }
 0xba0   : > { %v1466_v27 = vpop.f32.mrf.mxu3 }
 0xba1   : > { %v1476_v23 = vpack.c.bf16 %v1466_v27, %v1464_v14  ;;  %v2591_v14 = vld [vmem:[%s3328_s3 + $0x140] sm:$0xff]  ;;  %v2620_v27 = vld [vmem:[%s3329_s4 + $0x9] ss:$0 sm:$0xff] }
 0xba2   : > { %1684 = vmatpush.bf16.msra.mxu3 %v2591_v14 }
 0xba8   : > { %v1469_v19 = vpop.f32.mrf.mxu3 }
 0xbb0   : > { %v1471_v28 = vpop.f32.mrf.mxu3 }
 0xbb1   : > { %v1477_v20 = vpack.c.bf16 %v1471_v28, %v1469_v19 }
 0xbb3   : > { %1485 = vmatpush.bf16.msrb.mxu0 %v1477_v20 }
 0xbb7   : > { %1486 = vmatpush.bf16.msrb.mxu0 %v1476_v23 }
 0xbbb   : > { %1487 = vmatpush.bf16.msrb.mxu0 %v1475_v15 }
 0xbbf   : > { %1488 = vmatpush.bf16.msrb.mxu0 %v1474_v18 }
 0xbc2   : > { %2449 = vmatmul.msk.bf16.vlgmr.msrb.gmra.mxu0 %vm482_vm2, %v3089_v26 }
 0xbd2   : > { %2450 = vmatmul.msk.bf16.gmra.mxu0 %vm482_vm2, %v3094_v29 }
 0xbe2   : > { %2451 = vmatmul.msk.bf16.gmra.mxu0 %vm482_vm2, %v3099_v30 }
 0xbf2   : > { %2452 = vmatmul.msk.bf16.gmra.mxu0 %vm482_vm2, %v3104_v31 }
 0xc3f   : > { %v1490_v36 = vpop.f32.mrf.mxu0 }
 0xc40   : > { %v1491_v57 = vadd.f32 %v2619_v56, %v1490_v36 }
 0xc42   : > { %v1510_v37 = vmax.f32 %v1491_v57, 0.0 }
 0xc47   : > { %v1492_v34 = vpop.f32.mrf.mxu0 }
 0xc48   : > { %v1493_v58 = vadd.f32 %v2619_v56, %v1492_v34 }
 0xc4a   : > { %v1511_v35 = vmax.f32 %v1493_v58, 0.0 }
 0xc4c   : > { %v1525_v59 = vpack.c.bf16 %v1511_v35, %v1510_v37 }
 0xc4e   : > { %2466 = vmatmul.msk.bf16.vlgmr.msrb.gmra.mxu2 %vm555_vm3, %v1525_v59 }
 0xc4f   : > { %v1495_v39 = vpop.f32.mrf.mxu0 }
 0xc50   : > { %v1496_v38 = vadd.f32 %v2619_v56, %v1495_v39 }
 0xc52   : > { %v1512_v21 = vmax.f32 %v1496_v38, 0.0 }
 0xc57   : > { %v1497_v16 = vpop.f32.mrf.mxu0 }
 0xc58   : > { %v1498_v41 = vadd.f32 %v2619_v56, %v1497_v16 }
 0xc5a   : > { %v1513_v5 = vmax.f32 %v1498_v41, 0.0 }
 0xc5c   : > { %v1526_v17 = vpack.c.bf16 %v1513_v5, %v1512_v21 }
 0xc5e   : > { %2467 = vmatmul.msk.bf16.gmra.mxu2 %vm555_vm3, %v1526_v17 }
 0xc5f   : > { %v1500_v22 = vpop.f32.mrf.mxu0 }
 0xc60   : > { %v1501_v25 = vadd.f32 %v2619_v56, %v1500_v22 }
 0xc62   : > { %v1514_v43 = vmax.f32 %v1501_v25, 0.0 }
 0xc67   : > { %v1502_v47 = vpop.f32.mrf.mxu0 }
 0xc68   : > { %v1503_v24 = vadd.f32 %v2619_v56, %v1502_v47 }
 0xc6a   : > { %v1515_v44 = vmax.f32 %v1503_v24, 0.0 }
 0xc6c   : > { %v1527_v45 = vpack.c.bf16 %v1515_v44, %v1514_v43 }
 0xc6e   : > { %2468 = vmatmul.msk.bf16.gmra.mxu2 %vm555_vm3, %v1527_v45 }
 0xc6f   : > { %v1505_v46 = vpop.f32.mrf.mxu0 }
 0xc70   : > { %v1506_v49 = vadd.f32 %v2619_v56, %v1505_v46 }
 0xc72   : > { %v1516_v61 = vmax.f32 %v1506_v49, 0.0 }
 0xc77   : > { %v1507_v50 = vpop.f32.mrf.mxu0 }
 0xc78   : > { %v1508_v51 = vadd.f32 %v2619_v56, %v1507_v50 }
 0xc7a   : > { %v1517_v52 = vmax.f32 %v1508_v51, 0.0 }
 0xc7c   : > { %v1528_v54 = vpack.c.bf16 %v1517_v52, %v1516_v61 }
 0xc7e   : > { %2469 = vmatmul.msk.bf16.gmra.mxu2 %vm555_vm3, %v1528_v54 }
 0xcd1   : > { %v1562_v60 = vpop.f32.mrf.mxu2 }
 0xcd9   : > { %v1564_v55 = vpop.f32.mrf.mxu2 }
 0xcda   : > { %v1582_v12 = vpack.c.bf16 %v1564_v55, %v1562_v60 }
 0xce1   : > { %v1567_v1 = vpop.f32.mrf.mxu2 }
 0xce9   : > { %v1569_v2 = vpop.f32.mrf.mxu2 }
 0xcea   : > { %v1583_v9 = vpack.c.bf16 %v1569_v2, %v1567_v1 }
 0xcf1   : > { %v1572_v3 = vpop.f32.mrf.mxu2 }
 0xcf9   : > { %v1574_v6 = vpop.f32.mrf.mxu2 }
 0xcfa   : > { %v1584_v0 = vpack.c.bf16 %v1574_v6, %v1572_v3 }
 0xd01   : > { %v1577_v10 = vpop.f32.mrf.mxu2 }
 0xd09   : > { %v1579_v7 = vpop.f32.mrf.mxu2 }
 0xd0a   : > { %v1585_v63 = vpack.c.bf16 %v1579_v7, %v1577_v10 }
 0xd0c   : > { %1593 = vmatpush.bf16.msrb.mxu1 %v1585_v63 }
 0xd10   : > { %1594 = vmatpush.bf16.msrb.mxu1 %v1584_v0 }
 0xd14   : > { %1595 = vmatpush.bf16.msrb.mxu1 %v1583_v9 }
 0xd18   : > { %1596 = vmatpush.bf16.msrb.mxu1 %v1582_v12  ;;  %v2594_v12 = vld [vmem:[%s3328_s3 + $0x168] sm:$0xff] }
 0xd19   : > { %1791 = vmatpush.bf16.msra.mxu2 %v2594_v12 }
 0xd1b   : > { %2470 = vmatmul.msk.bf16.vlgmr.msrb.gmra.mxu1 %vm482_vm2, %v3089_v26 }
 0xd1d   : > { %1792 = vmatpush.bf16.msra.mxu2 %v2593_v13 }
 0xd2b   : > { %2471 = vmatmul.msk.bf16.gmra.mxu1 %vm482_vm2, %v3094_v29 }
 0xd3b   : > { %2472 = vmatmul.msk.bf16.gmra.mxu1 %vm482_vm2, %v3099_v30 }
 0xd4b   : > { %2473 = vmatmul.msk.bf16.gmra.mxu1 %vm482_vm2, %v3104_v31 }
 0xd98   : > { %v1598_v19 = vpop.f32.mrf.mxu1 }
 0xd99   : > { %v1599_v28 = vadd.f32 %v2620_v27, %v1598_v19 }
 0xd9b   : > { %v1618_v20 = vmax.f32 %v1599_v28, 0.0 }
 0xd9d   : > { %v1626_v18 = vadd.f32 %v1618_v20, %v3054_v4 }
 0xd9f   : > { %v3140_v36 = vmul.f32 0.5, %v1626_v18 }
 0xda0   : > { %v1600_v23 = vpop.f32.mrf.mxu1 }
 0xda1   : > { %v1601_v15 = vadd.f32 %v2620_v27, %v1600_v23 }
 0xda3   : > { %v1619_v32 = vmax.f32 %v1601_v15, 0.0 }
 0xda5   : > { %v1627_v33 = vadd.f32 %v1619_v32, %v3056_v40 }
 0xda7   : > { %v3142_v56 = vmul.f32 0.5, %v1627_v33 }
 0xda8   : > { %v1603_v57 = vpop.f32.mrf.mxu1 }
 0xda9   : > { %v1649_v34 = vpack.c.bf16 %v3142_v56, %v3140_v36  ;;  %v1604_v58 = vadd.f32 %v2620_v27, %v1603_v57 }
 0xdab   : > { %2487 = vmatmul.msk.bf16.vlgmr.msra.gmra.mxu3 %vm555_vm3, %v1649_v34  ;;  %v1620_v37 = vmax.f32 %v1604_v58, 0.0 }
 0xdad   : > { %v1628_v39 = vadd.f32 %v1620_v37, %v3063_v48 }
 0xdaf   : > { %v3149_v40 = vmul.f32 0.5, %v1628_v39 }
 0xdb0   : > { %v1605_v35 = vpop.f32.mrf.mxu1 }
 0xdb1   : > { %v1606_v59 = vadd.f32 %v2620_v27, %v1605_v35 }
 0xdb3   : > { %v1621_v4 = vmax.f32 %v1606_v59, 0.0 }
 0xdb5   : > { %v1629_v38 = vadd.f32 %v1621_v4, %v3065_v42 }
 0xdb7   : > { %v3151_v16 = vmul.f32 0.5, %v1629_v38 }
 0xdb8   : > { %v1608_v41 = vpop.f32.mrf.mxu1 }
 0xdb9   : > { %v1650_v21 = vpack.c.bf16 %v3151_v16, %v3149_v40  ;;  %v1609_v5 = vadd.f32 %v2620_v27, %v1608_v41 }
 0xdbb   : > { %2488 = vmatmul.msk.bf16.gmra.mxu3 %vm555_vm3, %v1650_v21  ;;  %v1622_v17 = vmax.f32 %v1609_v5, 0.0 }
 0xdbd   : > { %v1630_v47 = vadd.f32 %v1622_v17, %v3072_v62 }
 0xdbf   : > { %v3158_v42 = vmul.f32 0.5, %v1630_v47 }
 0xdc0   : > { %v1610_v22 = vpop.f32.mrf.mxu1 }
 0xdc1   : > { %v1611_v25 = vadd.f32 %v2620_v27, %v1610_v22 }
 0xdc3   : > { %v1623_v48 = vmax.f32 %v1611_v25, 0.0 }
 0xdc5   : > { %v1631_v24 = vadd.f32 %v1623_v48, %v3074_v53 }
 0xdc7   : > { %v3160_v43 = vmul.f32 0.5, %v1631_v24 }
 0xdc8   : > { %v1613_v44 = vpop.f32.mrf.mxu1 }
 0xdc9   : > { %v1651_v45 = vpack.c.bf16 %v3160_v43, %v3158_v42  ;;  %v1614_v46 = vadd.f32 %v2620_v27, %v1613_v44 }
 0xdcb   : > { %2489 = vmatmul.msk.bf16.gmra.mxu3 %vm555_vm3, %v1651_v45  ;;  %v1624_v49 = vmax.f32 %v1614_v46, 0.0 }
 0xdcd   : > { %v1632_v61 = vadd.f32 %v1624_v49, %v3081_v11 }
 0xdcf   : > { %v3167_v53 = vmul.f32 0.5, %v1632_v61 }
 0xdd0   : > { %v1615_v50 = vpop.f32.mrf.mxu1 }
 0xdd1   : > { %v1616_v51 = vadd.f32 %v2620_v27, %v1615_v50  ;;  %v2621_v27 = vld [vmem:[%s3329_s4 + $0xa] ss:$0 sm:$0xff] }
 0xdd3   : > { %v1625_v62 = vmax.f32 %v1616_v51, 0.0 }
 0xdd5   : > { %v1633_v52 = vadd.f32 %v1625_v62, %v3083_v8 }
 0xdd7   : > { %v3169_v54 = vmul.f32 0.5, %v1633_v52 }
 0xdd9   : > { %v1652_v60 = vpack.c.bf16 %v3169_v54, %v3167_v53 }
 0xddb   : > { %2490 = vmatmul.msk.bf16.gmra.mxu3 %vm555_vm3, %v1652_v60 }
 0xe2e   : > { %v1686_v55 = vpop.f32.mrf.mxu3 }
 0xe36   : > { %v1688_v1 = vpop.f32.mrf.mxu3 }
 0xe37   : > { %v1706_v9 = vpack.c.bf16 %v1688_v1, %v1686_v55 }
 0xe3e   : > { %v1691_v2 = vpop.f32.mrf.mxu3 }
 0xe46   : > { %v1693_v3 = vpop.f32.mrf.mxu3 }
 0xe47   : > { %v1707_v0 = vpack.c.bf16 %v1693_v3, %v1691_v2  ;;  %v2596_v3 = vld [vmem:[%s3328_s3 + $0x188] sm:$0xff] }
 0xe48   : > { %1915 = vmatpush.bf16.msrb.mxu3 %v2596_v3  ;;  %v2597_v3 = vld [vmem:[%s3328_s3 + $0x1a0] sm:$0xff] }
 0xe4e   : > { %v1696_v6 = vpop.f32.mrf.mxu3 }
 0xe56   : > { %v1698_v10 = vpop.f32.mrf.mxu3 }
 0xe57   : > { %v1708_v8 = vpack.c.bf16 %v1698_v10, %v1696_v6  ;;  %v2595_v6 = vld [vmem:[%s3328_s3 + $0x180] sm:$0xff]  ;;  %v2622_v10 = vld [vmem:[%s3329_s4 + $0xb] ss:$0 sm:$0xff] }
 0xe58   : > { %1916 = vmatpush.bf16.msrb.mxu3 %v2595_v6  ;;  %v2623_v6 = vld [vmem:[%s3329_s4 + $0xc] ss:$0 sm:$0xff] }
 0xe5e   : > { %v1701_v7 = vpop.f32.mrf.mxu3 }
 0xe66   : > { %v1703_v11 = vpop.f32.mrf.mxu3 }
 0xe67   : > { %v1709_v63 = vpack.c.bf16 %v1703_v11, %v1701_v7 }
 0xe69   : > { %1717 = vmatpush.bf16.msra.mxu0 %v1709_v63 }
 0xe6d   : > { %1718 = vmatpush.bf16.msra.mxu0 %v1708_v8 }
 0xe71   : > { %1719 = vmatpush.bf16.msra.mxu0 %v1707_v0 }
 0xe75   : > { %1720 = vmatpush.bf16.msra.mxu0 %v1706_v9 }
 0xe78   : > { %2491 = vmatmul.msk.bf16.vlgmr.msra.gmra.mxu0 %vm482_vm2, %v3089_v26 }
 0xe88   : > { %2492 = vmatmul.msk.bf16.gmra.mxu0 %vm482_vm2, %v3094_v29 }
 0xe98   : > { %2493 = vmatmul.msk.bf16.gmra.mxu0 %vm482_vm2, %v3099_v30 }
 0xea8   : > { %2494 = vmatmul.msk.bf16.gmra.mxu0 %vm482_vm2, %v3104_v31 }
 0xef5   : > { %v1722_v14 = vpop.f32.mrf.mxu0 }
 0xef6   : > { %v1723_v19 = vadd.f32 %v2621_v27, %v1722_v14 }
 0xef8   : > { %v1742_v23 = vmax.f32 %v1723_v19, 0.0 }
 0xefd   : > { %v1724_v28 = vpop.f32.mrf.mxu0 }
 0xefe   : > { %v1725_v20 = vadd.f32 %v2621_v27, %v1724_v28 }
 0xf00   : > { %v1743_v15 = vmax.f32 %v1725_v20, 0.0 }
 0xf02   : > { %v1757_v18 = vpack.c.bf16 %v1743_v15, %v1742_v23 }
 0xf04   : > { %2508 = vmatmul.msk.bf16.vlgmr.msra.gmra.mxu2 %vm555_vm3, %v1757_v18 }
 0xf05   : > { %v1727_v32 = vpop.f32.mrf.mxu0 }
 0xf06   : > { %v1728_v33 = vadd.f32 %v2621_v27, %v1727_v32 }
 0xf08   : > { %v1744_v58 = vmax.f32 %v1728_v33, 0.0 }
 0xf0d   : > { %v1729_v57 = vpop.f32.mrf.mxu0 }
 0xf0e   : > { %v1730_v34 = vadd.f32 %v2621_v27, %v1729_v57 }
 0xf10   : > { %v1745_v37 = vmax.f32 %v1730_v34, 0.0 }
 0xf12   : > { %v1758_v35 = vpack.c.bf16 %v1745_v37, %v1744_v58 }
 0xf14   : > { %2509 = vmatmul.msk.bf16.gmra.mxu2 %vm555_vm3, %v1758_v35 }
 0xf15   : > { %v1732_v59 = vpop.f32.mrf.mxu0 }
 0xf16   : > { %v1733_v39 = vadd.f32 %v2621_v27, %v1732_v59 }
 0xf18   : > { %v1746_v41 = vmax.f32 %v1733_v39, 0.0 }
 0xf1d   : > { %v1734_v4 = vpop.f32.mrf.mxu0 }
 0xf1e   : > { %v1735_v38 = vadd.f32 %v2621_v27, %v1734_v4 }
 0xf20   : > { %v1747_v21 = vmax.f32 %v1735_v38, 0.0 }
 0xf22   : > { %v1759_v5 = vpack.c.bf16 %v1747_v21, %v1746_v41 }
 0xf24   : > { %2510 = vmatmul.msk.bf16.gmra.mxu2 %vm555_vm3, %v1759_v5 }
 0xf25   : > { %v1737_v17 = vpop.f32.mrf.mxu0 }
 0xf26   : > { %v1738_v22 = vadd.f32 %v2621_v27, %v1737_v17 }
 0xf28   : > { %v1748_v48 = vmax.f32 %v1738_v22, 0.0 }
 0xf2d   : > { %v1739_v25 = vpop.f32.mrf.mxu0 }
 0xf2e   : > { %v1740_v47 = vadd.f32 %v2621_v27, %v1739_v25 }
 0xf30   : > { %v1749_v24 = vmax.f32 %v1740_v47, 0.0 }
 0xf32   : > { %v1760_v44 = vpack.c.bf16 %v1749_v24, %v1748_v48 }
 0xf34   : > { %2511 = vmatmul.msk.bf16.gmra.mxu2 %vm555_vm3, %v1760_v44 }
 0xf87   : > { %v1794_v45 = vpop.f32.mrf.mxu2 }
 0xf8f   : > { %v1796_v46 = vpop.f32.mrf.mxu2 }
 0xf90   : > { %v1814_v2 = vpack.c.bf16 %v1796_v46, %v1794_v45 }
 0xf97   : > { %v1799_v49 = vpop.f32.mrf.mxu2 }
 0xf9f   : > { %v1801_v50 = vpop.f32.mrf.mxu2 }
 0xfa0   : > { %v1815_v1 = vpack.c.bf16 %v1801_v50, %v1799_v49 }
 0xfa7   : > { %v1804_v51 = vpop.f32.mrf.mxu2 }
 0xfaf   : > { %v1806_v61 = vpop.f32.mrf.mxu2 }
 0xfb0   : > { %v1816_v55 = vpack.c.bf16 %v1806_v61, %v1804_v51 }
 0xfb7   : > { %v1809_v62 = vpop.f32.mrf.mxu2 }
 0xfbf   : > { %v1811_v52 = vpop.f32.mrf.mxu2 }
 0xfc0   : > { %v1817_v60 = vpack.c.bf16 %v1811_v52, %v1809_v62 }
 0xfc2   : > { %1825 = vmatpush.bf16.msra.mxu1 %v1817_v60 }
 0xfc6   : > { %1826 = vmatpush.bf16.msra.mxu1 %v1816_v55 }
 0xfca   : > { %1827 = vmatpush.bf16.msra.mxu1 %v1815_v1 }
 0xfce   : > { %1828 = vmatpush.bf16.msra.mxu1 %v1814_v2  ;;  %v2598_v2 = vld [vmem:[%s3328_s3 + $0x1a8] sm:$0xff] }
 0xfcf   : > { %2039 = vmatpush.bf16.msrb.mxu2 %v2598_v2 }
 0xfd1   : > { %2512 = vmatmul.msk.bf16.vlgmr.msra.gmra.mxu1 %vm482_vm2, %v3089_v26 }
 0xfd3   : > { %2040 = vmatpush.bf16.msrb.mxu2 %v2597_v3 }
 0xfe1   : > { %2513 = vmatmul.msk.bf16.gmra.mxu1 %vm482_vm2, %v3094_v29 }
 0xff1   : > { %2514 = vmatmul.msk.bf16.gmra.mxu1 %vm482_vm2, %v3099_v30 }
0x1001   : > { %2515 = vmatmul.msk.bf16.gmra.mxu1 %vm482_vm2, %v3104_v31 }
0x104e   : > { %v1830_v7 = vpop.f32.mrf.mxu1 }
0x104f   : > { %v1831_v11 = vadd.f32 %v2622_v10, %v1830_v7 }
0x1051   : > { %v1850_v63 = vmax.f32 %v1831_v11, 0.0 }
0x1053   : > { %v1858_v9 = vadd.f32 %v1850_v63, %v3140_v36 }
0x1055   : > { %v3214_v14 = vmul.f32 0.5, %v1858_v9 }
0x1056   : > { %v1832_v8 = vpop.f32.mrf.mxu1 }
0x1057   : > { %v1833_v0 = vadd.f32 %v2622_v10, %v1832_v8 }
0x1059   : > { %v1851_v12 = vmax.f32 %v1833_v0, 0.0 }
0x105b   : > { %v1859_v13 = vadd.f32 %v1851_v12, %v3142_v56 }
0x105d   : > { %v3216_v27 = vmul.f32 0.5, %v1859_v13 }
0x105e   : > { %v1835_v19 = vpop.f32.mrf.mxu1 }
0x105f   : > { %v1881_v28 = vpack.c.bf16 %v3216_v27, %v3214_v14  ;;  %v1836_v20 = vadd.f32 %v2622_v10, %v1835_v19 }
0x1061   : > { %2529 = vmatmul.msk.bf16.vlgmr.msrb.gmra.mxu3 %vm555_vm3, %v1881_v28  ;;  %v1852_v23 = vmax.f32 %v1836_v20, 0.0 }
0x1063   : > { %v1860_v32 = vadd.f32 %v1852_v23, %v3149_v40 }
0x1065   : > { %v3223_v56 = vmul.f32 0.5, %v1860_v32 }
0x1066   : > { %v1837_v15 = vpop.f32.mrf.mxu1 }
0x1067   : > { %v1838_v18 = vadd.f32 %v2622_v10, %v1837_v15 }
0x1069   : > { %v1853_v36 = vmax.f32 %v1838_v18, 0.0 }
0x106b   : > { %v1861_v33 = vadd.f32 %v1853_v36, %v3151_v16 }
0x106d   : > { %v3225_v57 = vmul.f32 0.5, %v1861_v33 }
0x106e   : > { %v1840_v34 = vpop.f32.mrf.mxu1 }
0x106f   : > { %v1882_v58 = vpack.c.bf16 %v3225_v57, %v3223_v56  ;;  %v1841_v37 = vadd.f32 %v2622_v10, %v1840_v34 }
0x1071   : > { %2530 = vmatmul.msk.bf16.gmra.mxu3 %vm555_vm3, %v1882_v58  ;;  %v1854_v35 = vmax.f32 %v1841_v37, 0.0 }
0x1073   : > { %v1862_v4 = vadd.f32 %v1854_v35, %v3158_v42 }
0x1075   : > { %v3232_v16 = vmul.f32 0.5, %v1862_v4 }
0x1076   : > { %v1842_v59 = vpop.f32.mrf.mxu1 }
0x1077   : > { %v1843_v39 = vadd.f32 %v2622_v10, %v1842_v59 }
0x1079   : > { %v1855_v40 = vmax.f32 %v1843_v39, 0.0 }
0x107b   : > { %v1863_v38 = vadd.f32 %v1855_v40, %v3160_v43 }
0x107d   : > { %v3234_v41 = vmul.f32 0.5, %v1863_v38 }
0x107e   : > { %v1845_v21 = vpop.f32.mrf.mxu1 }
0x107f   : > { %v1883_v5 = vpack.c.bf16 %v3234_v41, %v3232_v16  ;;  %v1846_v17 = vadd.f32 %v2622_v10, %v1845_v21 }
0x1081   : > { %2531 = vmatmul.msk.bf16.gmra.mxu3 %vm555_vm3, %v1883_v5  ;;  %v1856_v22 = vmax.f32 %v1846_v17, 0.0 }
0x1083   : > { %v1864_v48 = vadd.f32 %v1856_v22, %v3167_v53 }
0x1085   : > { %v3241_v43 = vmul.f32 0.5, %v1864_v48 }
0x1086   : > { %v1847_v25 = vpop.f32.mrf.mxu1 }
0x1087   : > { %v1848_v47 = vadd.f32 %v2622_v10, %v1847_v25 }
0x1089   : > { %v1857_v42 = vmax.f32 %v1848_v47, 0.0 }
0x108b   : > { %v1865_v24 = vadd.f32 %v1857_v42, %v3169_v54 }
0x108d   : > { %v3243_v44 = vmul.f32 0.5, %v1865_v24 }
0x108f   : > { %v1884_v45 = vpack.c.bf16 %v3243_v44, %v3241_v43 }
0x1091   : > { %2532 = vmatmul.msk.bf16.gmra.mxu3 %vm555_vm3, %v1884_v45 }
0x10e4   : > { %v1918_v46 = vpop.f32.mrf.mxu3 }
0x10ec   : > { %v1920_v49 = vpop.f32.mrf.mxu3 }
0x10ed   : > { %v1938_v1 = vpack.c.bf16 %v1920_v49, %v1918_v46 }
0x10f4   : > { %v1923_v50 = vpop.f32.mrf.mxu3 }
0x10fc   : > { %v1925_v51 = vpop.f32.mrf.mxu3 }
0x10fd   : > { %v1939_v55 = vpack.c.bf16 %v1925_v51, %v1923_v50 }
0x1104   : > { %v1928_v61 = vpop.f32.mrf.mxu3 }
0x110c   : > { %v1930_v62 = vpop.f32.mrf.mxu3 }
0x110d   : > { %v1940_v54 = vpack.c.bf16 %v1930_v62, %v1928_v61 }
0x1114   : > { %v1933_v52 = vpop.f32.mrf.mxu3 }
0x111c   : > { %v1935_v53 = vpop.f32.mrf.mxu3 }
0x111d   : > { %v1941_v60 = vpack.c.bf16 %v1935_v53, %v1933_v52 }
0x111f   : > { %1949 = vmatpush.bf16.msrb.mxu0 %v1941_v60 }
0x1123   : > { %1950 = vmatpush.bf16.msrb.mxu0 %v1940_v54 }
0x1127   : > { %1951 = vmatpush.bf16.msrb.mxu0 %v1939_v55 }
0x112b   : > { %1952 = vmatpush.bf16.msrb.mxu0 %v1938_v1  ;;  %v2624_v1 = vld [vmem:[%s3329_s4 + $0xd] ss:$0 sm:$0xff] }
0x112e   : > { %2533 = vmatmul.msk.bf16.vlgmr.msrb.gmra.mxu0 %vm482_vm2, %v3089_v26 }
0x113e   : > { %2534 = vmatmul.msk.bf16.gmra.mxu0 %vm482_vm2, %v3094_v29 }
0x114e   : > { %2535 = vmatmul.msk.bf16.gmra.mxu0 %vm482_vm2, %v3099_v30 }
0x115e   : > { %2536 = vmatmul.msk.bf16.gmra.mxu0 %vm482_vm2, %v3104_v31 }
0x11ab   : > { %v1954_v10 = vpop.f32.mrf.mxu0 }
0x11ac   : > { %v1955_v7 = vadd.f32 %v2623_v6, %v1954_v10 }
0x11ae   : > { %v1974_v11 = vmax.f32 %v1955_v7, 0.0 }
0x11b0   : > { %v1982_v63 = vadd.f32 %v1974_v11, %v3214_v14 }
0x11b2   : > { %v1990_v8 = vmul.f32 0.5, %v1982_v63 }
0x11b3   : > { %v1956_v0 = vpop.f32.mrf.mxu0 }
0x11b4   : > { %2098 = vst.msk [vmem:[%s3270_s12] sm:$0xff] %vm555_vm3, %v1990_v8  ;;  %v1957_v9 = vadd.f32 %v2623_v6, %v1956_v0 }
0x11b6   : > { %v1975_v12 = vmax.f32 %v1957_v9, 0.0 }
0x11b8   : > { %v1983_v13 = vadd.f32 %v1975_v12, %v3216_v27 }
0x11ba   : > { %v1991_v19 = vmul.f32 0.5, %v1983_v13 }
0x11bb   : > { %v1959_v28 = vpop.f32.mrf.mxu0 }
0x11bc   : > { %v2005_v14 = vpack.c.bf16 %v1991_v19, %v1990_v8  ;;  %2099 = vst.msk [vmem:[%s3270_s12 + $0x8] sm:$0xff] %vm555_vm3, %v1991_v19  ;;  %v1960_v20 = vadd.f32 %v2623_v6, %v1959_v28 }
0x11be   : > { %v1976_v23 = vmax.f32 %v1960_v20, 0.0  ;;  %2550 = vmatmul.msk.bf16.vlgmr.msrb.gmra.mxu2 %vm555_vm3, %v2005_v14 }
0x11c0   : > { %v1984_v15 = vadd.f32 %v1976_v23, %v3223_v56 }
0x11c2   : > { %v1992_v18 = vmul.f32 0.5, %v1984_v15 }
0x11c3   : > { %v1961_v32 = vpop.f32.mrf.mxu0 }
0x11c4   : > { %2100 = vst.msk [vmem:[%s3270_s12 + $0x10] sm:$0xff] %vm555_vm3, %v1992_v18  ;;  %v1962_v36 = vadd.f32 %v2623_v6, %v1961_v32 }
0x11c6   : > { %v1977_v33 = vmax.f32 %v1962_v36, 0.0 }
0x11c8   : > { %v1985_v27 = vadd.f32 %v1977_v33, %v3225_v57 }
0x11ca   : > { %v1993_v34 = vmul.f32 0.5, %v1985_v27 }
0x11cb   : > { %v1964_v58 = vpop.f32.mrf.mxu0 }
0x11cc   : > { %v2006_v37 = vpack.c.bf16 %v1993_v34, %v1992_v18  ;;  %2101 = vst.msk [vmem:[%s3270_s12 + $0x18] sm:$0xff] %vm555_vm3, %v1993_v34  ;;  %v1965_v35 = vadd.f32 %v2623_v6, %v1964_v58 }
0x11ce   : > { %v1978_v59 = vmax.f32 %v1965_v35, 0.0  ;;  %2551 = vmatmul.msk.bf16.gmra.mxu2 %vm555_vm3, %v2006_v37 }
0x11d0   : > { %v1986_v56 = vadd.f32 %v1978_v59, %v3232_v16 }
0x11d2   : > { %v1994_v39 = vmul.f32 0.5, %v1986_v56 }
0x11d3   : > { %v1966_v4 = vpop.f32.mrf.mxu0 }
0x11d4   : > { %2102 = vst.msk [vmem:[%s3270_s12 + $0x20] sm:$0xff] %vm555_vm3, %v1994_v39  ;;  %v1967_v40 = vadd.f32 %v2623_v6, %v1966_v4 }
0x11d6   : > { %v1979_v38 = vmax.f32 %v1967_v40, 0.0 }
0x11d8   : > { %v1987_v57 = vadd.f32 %v1979_v38, %v3234_v41 }
0x11da   : > { %v1995_v21 = vmul.f32 0.5, %v1987_v57 }
0x11db   : > { %v1969_v5 = vpop.f32.mrf.mxu0 }
0x11dc   : > { %v2007_v17 = vpack.c.bf16 %v1995_v21, %v1994_v39  ;;  %2103 = vst.msk [vmem:[%s3270_s12 + $0x28] sm:$0xff] %vm555_vm3, %v1995_v21  ;;  %v1970_v22 = vadd.f32 %v2623_v6, %v1969_v5 }
0x11de   : > { %v1980_v25 = vmax.f32 %v1970_v22, 0.0  ;;  %2552 = vmatmul.msk.bf16.gmra.mxu2 %vm555_vm3, %v2007_v17 }
0x11e0   : > { %v1988_v16 = vadd.f32 %v1980_v25, %v3241_v43 }
0x11e2   : > { %v1996_v47 = vmul.f32 0.5, %v1988_v16 }
0x11e3   : > { %v1971_v48 = vpop.f32.mrf.mxu0 }
0x11e4   : > { %2104 = vst.msk [vmem:[%s3270_s12 + $0x30] sm:$0xff] %vm555_vm3, %v1996_v47  ;;  %v1972_v42 = vadd.f32 %v2623_v6, %v1971_v48 }
0x11e6   : > { %v1981_v24 = vmax.f32 %v1972_v42, 0.0 }
0x11e8   : > { %v1989_v41 = vadd.f32 %v1981_v24, %v3243_v44 }
0x11ea   : > { %v1997_v45 = vmul.f32 0.5, %v1989_v41 }
0x11ec   : > { %v2008_v46 = vpack.c.bf16 %v1997_v45, %v1996_v47  ;;  %2105 = vst.msk [vmem:[%s3270_s12 + $0x38] sm:$0xff] %vm555_vm3, %v1997_v45 }
0x11ee   : > { %2553 = vmatmul.msk.bf16.gmra.mxu2 %vm555_vm3, %v2008_v46 }
0x1241   : > { %v2042_v49 = vpop.f32.mrf.mxu2 }
0x1249   : > { %v2044_v50 = vpop.f32.mrf.mxu2 }
0x124a   : > { %v2062_v55 = vpack.c.bf16 %v2044_v50, %v2042_v49 }
0x1251   : > { %v2047_v51 = vpop.f32.mrf.mxu2 }
0x1259   : > { %v2049_v61 = vpop.f32.mrf.mxu2 }
0x125a   : > { %v2063_v44 = vpack.c.bf16 %v2049_v61, %v2047_v51 }
0x1261   : > { %v2052_v62 = vpop.f32.mrf.mxu2 }
0x1269   : > { %v2054_v43 = vpop.f32.mrf.mxu2 }
0x126a   : > { %v2064_v54 = vpack.c.bf16 %v2054_v43, %v2052_v62 }
0x1271   : > { %v2057_v52 = vpop.f32.mrf.mxu2 }
0x1279   : > { %v2059_v53 = vpop.f32.mrf.mxu2 }
0x127a   : > { %v2065_v60 = vpack.c.bf16 %v2059_v53, %v2057_v52 }
0x127c   : > { %2073 = vmatpush.bf16.msrb.mxu1 %v2065_v60 }
0x1280   : > { %2074 = vmatpush.bf16.msrb.mxu1 %v2064_v54 }
0x1284   : > { %2075 = vmatpush.bf16.msrb.mxu1 %v2063_v44 }
0x1288   : > { %2076 = vmatpush.bf16.msrb.mxu1 %v2062_v55 }
0x128b   : > { %2554 = vmatmul.msk.bf16.vlgmr.msrb.gmra.mxu1 %vm482_vm2, %v3089_v26 }
0x129b   : > { %2555 = vmatmul.msk.bf16.gmra.mxu1 %vm482_vm2, %v3094_v29 }
0x12ab   : > { %2556 = vmatmul.msk.bf16.gmra.mxu1 %vm482_vm2, %v3099_v30 }
0x12bb   : > { %2557 = vmatmul.msk.bf16.gmra.mxu1 %vm482_vm2, %v3104_v31 }
0x1308   : > { %v2078_v2 = vpop.f32.mrf.mxu1 }
0x1309   : > { %v2079_v3 = vadd.f32 %v2624_v1, %v2078_v2 }
0x130b   : > { %2106 = vst.msk [vmem:[%s304_s18] sm:$0xff] %vm555_vm3, %v2079_v3 }
0x1310   : > { %v2080_v26 = vpop.f32.mrf.mxu1 }
0x1311   : > { %v2081_v29 = vadd.f32 %v2624_v1, %v2080_v26 }
0x1313   : > { %2107 = vst.msk [vmem:[%s304_s18 + $0x8] sm:$0xff] %vm555_vm3, %v2081_v29 }
0x1318   : > { %v2083_v30 = vpop.f32.mrf.mxu1 }
0x1319   : > { %v2084_v6 = vadd.f32 %v2624_v1, %v2083_v30 }
0x131b   : > { %2108 = vst.msk [vmem:[%s304_s18 + $0x10] sm:$0xff] %vm555_vm3, %v2084_v6 }
0x1320   : > { %v2085_v31 = vpop.f32.mrf.mxu1 }
0x1321   : > { %v2086_v10 = vadd.f32 %v2624_v1, %v2085_v31 }
0x1323   : > { %2109 = vst.msk [vmem:[%s304_s18 + $0x18] sm:$0xff] %vm555_vm3, %v2086_v10 }
0x1328   : > { %v2088_v7 = vpop.f32.mrf.mxu1 }
0x1329   : > { %v2089_v11 = vadd.f32 %v2624_v1, %v2088_v7 }
0x132b   : > { %2110 = vst.msk [vmem:[%s304_s18 + $0x20] sm:$0xff] %vm555_vm3, %v2089_v11 }
0x1330   : > { %v2090_v63 = vpop.f32.mrf.mxu1 }
0x1331   : > { %v2091_v8 = vadd.f32 %v2624_v1, %v2090_v63 }
0x1333   : > { %2111 = vst.msk [vmem:[%s304_s18 + $0x28] sm:$0xff] %vm555_vm3, %v2091_v8 }
0x1338   : > { %v2093_v0 = vpop.f32.mrf.mxu1 }
0x1339   : > { %v2094_v9 = vadd.f32 %v2624_v1, %v2093_v0 }
0x133b   : > { %2112 = vst.msk [vmem:[%s304_s18 + $0x30] sm:$0xff] %vm555_vm3, %v2094_v9 }
0x1340   : > { %v2095_v12 = vpop.f32.mrf.mxu1 }
0x1341   : > { %v2096_v13 = vadd.f32 %v2624_v1, %v2095_v12 }
0x1343   : > { %2113 = vst.msk [vmem:[%s304_s18 + $0x38] sm:$0xff] %vm555_vm3, %v2096_v13 }
0x1344 PF: > { %s17_s21 = sadd.s32 1, %s2635_s21  }
0x1345   : > { %p14_p4 = scmp.ge.s32.totalorder %s17_s21, 4  }
0x1347   :  { %16 = sbr.rel (!%p14_p4) target bundleno = 1 (0x1), region = 114 }

</bundles_post_ra>
